<compile_context>
chip_gen: v7x
topology: tpu7x:2x2x1
jax: 0.10.0
libtpu: 0.0.40
codegen_flags: <defaults>
</compile_context>

<pallas_src>
import functools

import jax
import jax.numpy as jnp
from jax.experimental import pallas as pl
from jax.experimental.pallas import tpu as pltpu

_LANES = 128
_BN_EPS = 1e-5


# --------------------------------------------------------------------------
# small helpers (lane/sublane padding + full-array block specs)
# --------------------------------------------------------------------------

def _round_up(d, m=_LANES):
    return ((d + m - 1) // m) * m


def _pad2d(x, rows, cols):
    pr, pc = rows - x.shape[0], cols - x.shape[1]
    if pr == 0 and pc == 0:
        return x
    return jnp.pad(x, ((0, pr), (0, pc)))


def _full_block(shape):
    nd = len(shape)
    return pl.BlockSpec(shape, lambda i: (0,) * nd)


def _vmem_limit_bytes():
    """Generation-aware VMEM cap (leave ~15% headroom for compiler scratch)."""
    try:
        cap = int(pltpu.get_tpu_info().vmem_capacity_bytes)
    except Exception:
        cap = 64 * 1024 * 1024
    return int(min(cap * 0.85, 112 * 1024 * 1024))


# --------------------------------------------------------------------------
# Fused Pallas kernel: the whole GConv.forward
# --------------------------------------------------------------------------

def _gconv_kernel(num_gcns, num_layers, n_true, *refs):
    """refs = [alpha(SMEM), a_hbm(ANY), x, mix, (w,b,gamma,beta)x(G*L), out, a_vmem]."""
    alpha_ref = refs[0]
    a_hbm_ref = refs[1]
    x_ref = refs[2]
    mix_ref = refs[3]
    n_par = 4 * num_gcns * num_layers
    par = refs[4:4 + n_par]
    o_ref = refs[4 + n_par]
    a_vmem = refs[5 + n_par]

    def get(g, l):
        base = 4 * (g * num_layers + l)
        return par[base], par[base + 1], par[base + 2], par[base + 3]

    # Single-buffered manual copy of the dominant [Np,Np] bf16 adjacency.
    # (grid=(1,) => auto-pipelining would only waste VMEM on a 2nd buffer.)
    pltpu.sync_copy(a_hbm_ref, a_vmem)
    a = a_vmem[...]                          # bf16 MXU operand, resident once

    alpha = alpha_ref[0]                     # shared torch.nn.PReLU() weight
    mix = mix_ref[...]                       # [Np, 128] lane-padded mixture weights

    n_pad = o_ref.shape[0]
    padded = n_pad != n_true
    if padded:
        row_ids = jax.lax.broadcasted_iota(jnp.int32, (n_pad, 1), 0)
        row_mask = (row_ids < n_true).astype(jnp.float32)
    inv_n = jnp.float32(1.0 / n_true)

    def bn_prelu(h, gamma, beta):
        # BatchNorm1d training semantics: biased variance over the TRUE node
        # count (pad rows masked out), eps=1e-5.  All math in f32 (v5e VPU).
        if padded:
            mean = jnp.sum(h * row_mask, axis=0, keepdims=True) * inv_n
            cen = h - mean
            var = jnp.sum(cen * cen * row_mask, axis=0, keepdims=True) * inv_n
        else:
            mean = jnp.mean(h, axis=0, keepdims=True)
            cen = h - mean
            var = jnp.mean(cen * cen, axis=0, keepdims=True)
        hn = cen * jax.lax.rsqrt(var + _BN_EPS)
        hn = hn * gamma + beta
        return jnp.where(hn >= 0.0, hn, alpha * hn)    # shared PReLU

    # ---- layer 0 ----------------------------------------------------------
    # A @ X is identical across mixture components: compute it ONCE; then
    # batch every component's layer-0 weight along lanes -> one wide matmul.
    ax0 = jnp.dot(a, x_ref[...], preferred_element_type=jnp.float32)
    ax0_b = ax0.astype(jnp.bfloat16)
    w0_cat = jnp.concatenate([get(g, 0)[0][...] for g in range(num_gcns)], axis=1)
    h0_cat = jnp.dot(ax0_b, w0_cat, preferred_element_type=jnp.float32)
    f1 = get(0, 0)[0].shape[1]
    zs = []
    for g in range(num_gcns):
        _, b_ref, ga_ref, be_ref = get(g, 0)
        h = h0_cat[:, g * f1:(g + 1) * f1] + b_ref[...]
        zs.append(bn_prelu(h, ga_ref[...], be_ref[...]))

    # ---- layers 1..L-1 ----------------------------------------------------
    # Batch the N^2 propagation matmul across components (lane concat) and
    # statically pick the association that minimizes the N^2 inner width.
    for l in range(1, num_layers):
        fin = get(0, l)[0].shape[0]
        fout = get(0, l)[0].shape[1]
        new_zs = []
        if fout <= fin:
            # A @ (Z W): inner width = G*fout
            zw_cat = jnp.concatenate(
                [jnp.dot(zs[g].astype(jnp.bfloat16), get(g, l)[0][...],
                         preferred_element_type=jnp.float32).astype(jnp.bfloat16)
                 for g in range(num_gcns)], axis=1)
            h_cat = jnp.dot(a, zw_cat, preferred_element_type=jnp.float32)
            for g in range(num_gcns):
                _, b_ref, ga_ref, be_ref = get(g, l)
                h = h_cat[:, g * fout:(g + 1) * fout] + b_ref[...]
                new_zs.append(bn_prelu(h, ga_ref[...], be_ref[...]))
        else:
            # (A @ Z) W: inner width = G*fin
            z_cat = jnp.concatenate(
                [zs[g].astype(jnp.bfloat16) for g in range(num_gcns)], axis=1)
            az_cat = jnp.dot(a, z_cat,
                             preferred_element_type=jnp.float32).astype(jnp.bfloat16)
            for g in range(num_gcns):
                w_ref, b_ref, ga_ref, be_ref = get(g, l)
                h = jnp.dot(az_cat[:, g * fin:(g + 1) * fin], w_ref[...],
                            preferred_element_type=jnp.float32) + b_ref[...]
                new_zs.append(bn_prelu(h, ga_ref[...], be_ref[...]))
        zs = new_zs

    # ---- per-node softmax mixture, accumulated directly into the output ---
    o_ref[...] = mix[:, 0:1] * zs[0]
    for g in range(1, num_gcns):
        o_ref[...] += mix[:, g:g + 1] * zs[g]


# --------------------------------------------------------------------------
# Wrapper around pallas_call
# --------------------------------------------------------------------------

def gconv_forward(params, x, edge_index, edge_weight=None):
    """GConv.forward: mixture-of-GCNs encoder in a single fused pallas_call."""
    n = x.shape[0]
    num_gcns = params["num_gcns"]
    num_layers = params["num_layers"]
    emb_dim = params["embedding_dim"]

    n_p = _round_up(n)                 # dense sublanes/lanes + full MXU rows
    fin0_p = _round_up(x.shape[1])
    emb_p = _round_up(emb_dim)

    # graph preprocessing (plain-JAX glue): dense PyG-style normalized A_hat,
    # zero-padded and cast to bf16 (halves its DMA + VMEM footprint).
    a_hat = normalized_adjacency(edge_index, n, edge_weight)
    a_p = _pad2d(a_hat, n_p, n_p).astype(jnp.bfloat16)

    # per-node mixture weights: softmax over the gcn axis (tiny), lane-padded
    mix = jax.nn.softmax(params["mixture_embeds"].astype(jnp.float32), axis=-1)
    mix_p = _pad2d(mix, n_p, _round_up(num_gcns))

    x_p = _pad2d(x.astype(jnp.float32), n_p, fin0_p).astype(jnp.bfloat16)
    alpha = jnp.reshape(params["alpha"], (1,)).astype(jnp.float32)

    operands = [alpha, a_p, x_p, mix_p]
    in_specs = [
        pl.BlockSpec(memory_space=pltpu.MemorySpace.SMEM),  # PReLU alpha scalar
        pl.BlockSpec(memory_space=pl.ANY),                  # A_hat stays in HBM
        _full_block(x_p.shape),
        _full_block(mix_p.shape),
    ]

    layer_dims_p = []
    for g in range(num_gcns):
        for l in range(num_layers):
            lp = params["gcn"][g][l]
            fi_p = _round_up(lp["w"].shape[0])
            fo_p = _round_up(lp["w"].shape[1])
            if g == 0:
                layer_dims_p.append((fi_p, fo_p))
            w_p = _pad2d(lp["w"].astype(jnp.float32), fi_p, fo_p).astype(jnp.bfloat16)
            b_p = _pad2d(lp["b"].reshape(1, -1).astype(jnp.float32), 1, fo_p)
            ga_p = _pad2d(lp["gamma"].reshape(1, -1).astype(jnp.float32), 1, fo_p)
            be_p = _pad2d(lp["beta"].reshape(1, -1).astype(jnp.float32), 1, fo_p)
            for arr in (w_p, b_p, ga_p, be_p):
                operands.append(arr)
                in_specs.append(_full_block(arr.shape))

    # advisory cost estimate (lets XLA overlap the adjacency scatter etc.)
    flops = 2 * n_p * n_p * fin0_p                              # shared A @ X
    flops += 2 * n_p * fin0_p * num_gcns * layer_dims_p[0][1]   # layer-0 weights
    for fi_p, fo_p in layer_dims_p[1:]:
        flops += num_gcns * 2 * n_p * fi_p * fo_p               # Z W per comp
        flops += 2 * n_p * n_p * num_gcns * min(fi_p, fo_p)     # propagation
    bytes_accessed = sum(int(op.size) * op.dtype.itemsize for op in operands)
    bytes_accessed += n_p * emb_p * 4
    cost = pl.CostEstimate(flops=int(flops),
                           transcendentals=int(num_gcns * num_layers * _LANES),
                           bytes_accessed=int(bytes_accessed))

    out_p = pl.pallas_call(
        functools.partial(_gconv_kernel, num_gcns, num_layers, n),
        grid=(1,),
        out_shape=jax.ShapeDtypeStruct((n_p, emb_p), jnp.float32),
        in_specs=in_specs,
        out_specs=_full_block((n_p, emb_p)),
        scratch_shapes=[pltpu.VMEM((n_p, n_p), jnp.bfloat16)],  # single A buffer
        compiler_params=pltpu.CompilerParams(
            dimension_semantics=("arbitrary",),
            vmem_limit_bytes=_vmem_limit_bytes(),
        ),
        cost_estimate=cost,
    )(*operands)
    return out_p[:n, :emb_dim]


# --------------------------------------------------------------------------
# Glue: dense PyG-style GCN normalization, parameter init, pure-JAX reference
# --------------------------------------------------------------------------

def normalized_adjacency(edge_index, num_nodes, edge_weight=None):
    """Dense equivalent of torch_geometric gcn_norm.

    Duplicate edges accumulate, directed edges are NOT symmetrized,
    aggregation happens at the target node (A[dst, src] += w), and weight-1
    self loops are added only for nodes that do not already have one
    (add_remaining_self_loops semantics; duplicate self loops accumulate here).
    """
    src, dst = edge_index[0], edge_index[1]
    w = (jnp.ones(src.shape, jnp.float32) if edge_weight is None
         else edge_weight.astype(jnp.float32))
    a = jnp.zeros((num_nodes, num_nodes), jnp.float32).at[dst, src].add(w)
    diag = jnp.diagonal(a)
    a = a + jnp.diag(jnp.where(diag == 0.0, 1.0, 0.0))
    deg = jnp.sum(a, axis=1)
    d_inv_sqrt = jnp.where(deg > 0.0, jax.lax.rsqrt(jnp.maximum(deg, 1e-12)), 0.0)
    return (d_inv_sqrt[:, None] * a) * d_inv_sqrt[None, :]


def init_params(key, num_nodes, input_dim, hidden_dim, embedding_dim,
                num_layers, num_gcns):
    assert num_layers >= 2
    dims = [input_dim] + [hidden_dim] * (num_layers - 1) + [embedding_dim]
    ks = jax.random.split(key, num_gcns * num_layers)
    scale = 0.1
    gcn = []
    idx = 0
    for _g in range(num_gcns):
        layers = []
        for l in range(num_layers):
            fin, fout = dims[l], dims[l + 1]
            layers.append({
                "w": scale * jax.random.normal(ks[idx], (fin, fout), jnp.float32),
                "b": jnp.zeros((fout,), jnp.float32),
                "gamma": jnp.ones((fout,), jnp.float32),   # Normalize(norm='batch')
                "beta": jnp.zeros((fout,), jnp.float32),
            })
            idx += 1
        gcn.append(layers)
    return {
        "gcn": gcn,
        "alpha": jnp.float32(0.25),  # single shared torch.nn.PReLU() parameter
        # mixture_embeds.weight initialized to 1/num_gcns like the PyTorch module
        "mixture_embeds": (1.0 / num_gcns) * jnp.ones((num_nodes, num_gcns), jnp.float32),
        "num_gcns": num_gcns,
        "num_layers": num_layers,
        "embedding_dim": embedding_dim,
    }


def _reference_forward(params, x, edge_index, edge_weight=None):
    """Pure-JAX f32 reference (no Pallas, no padding, no bf16)."""
    hi = jax.lax.Precision.HIGHEST
    a_hat = normalized_adjacency(edge_index, x.shape[0], edge_weight)
    mix = jax.nn.softmax(params["mixture_embeds"], axis=-1)
    alpha = params["alpha"]
    out = jnp.zeros((x.shape[0], params["embedding_dim"]), jnp.float32)
    for g in range(params["num_gcns"]):
        z = x.astype(jnp.float32)
        for l in range(params["num_layers"]):
            lp = params["gcn"][g][l]
            h = jnp.dot(a_hat, jnp.dot(z, lp["w"], precision=hi), precision=hi)
            h = h + lp["b"][None, :]
            mean = jnp.mean(h, axis=0, keepdims=True)
            var = jnp.mean((h - mean) ** 2, axis=0, keepdims=True)
            hn = (h - mean) * jax.lax.rsqrt(var + _BN_EPS)
            hn = hn * lp["gamma"][None, :] + lp["beta"][None, :]
            z = jnp.where(hn >= 0.0, hn, alpha * hn)
        out = out + mix[:, g:g + 1] * z
    return out


# --------------------------------------------------------------------------

if __name__ == "__main__":
    key = jax.random.PRNGKey(0)

    def run_case(case_key, num_nodes, input_dim, hidden_dim, embedding_dim,
                 num_layers, num_gcns, num_edges):
        k_x, k_e, k_p = jax.random.split(case_key, 3)
        x = jax.random.normal(k_x, (num_nodes, input_dim), jnp.float32)
        edge_index = jax.random.randint(k_e, (2, num_edges), 0, num_nodes, jnp.int32)
        params = init_params(k_p, num_nodes, input_dim, hidden_dim,
                             embedding_dim, num_layers, num_gcns)
        fwd = jax.jit(functools.partial(gconv_forward, params))
        out = jax.block_until_ready(fwd(x, edge_index))
        assert out.shape == (num_nodes, embedding_dim)
        assert bool(jnp.all(jnp.isfinite(out)))
        # validate the fused / padded / bf16-MXU Pallas path vs f32 reference
        ref = _reference_forward(params, x, edge_index)
        max_err = float(jnp.max(jnp.abs(out - ref)))
        rel = float(jnp.linalg.norm(out - ref) / (jnp.linalg.norm(ref) + 1e-12))
        assert max_err < 1e-1 and rel < 2.5e-2, (
            f"mismatch vs reference: max_abs={max_err:.3e} rel_fro={rel:.3e}")

    k1, k2 = jax.random.split(key)
    # primary config (N already a multiple of 128)
    run_case(k1, num_nodes=128, input_dim=16, hidden_dim=32, embedding_dim=32,
             num_layers=2, num_gcns=2, num_edges=512)
    # padded-N / deeper-stack config: exercises masked BatchNorm statistics and
    # the (A Z) W association branch (padded embedding wider than hidden)
    run_case(k2, num_nodes=100, input_dim=12, hidden_dim=24, embedding_dim=136,
             num_layers=3, num_gcns=3, num_edges=300)

    print("KERNEL_OK")
</pallas_src>

<mosaic_0001>
module attributes {stable_mosaic.version = 11 : i64} {
  func.func private @main(%arg0: i32) attributes {dimension_semantics = [#tpu.dimension_semantics<core_parallel>], iteration_bounds = array<i64: 2>, tpu.core_type = #tpu.core_type<sc_scalar_subcore>, window_params = []} {
    return
  }
}

module attributes {stable_mosaic.version = 11 : i64} {
  func.func private @main(%arg0: i32) attributes {dimension_semantics = [#tpu.dimension_semantics<core_parallel>], iteration_bounds = array<i64: 2>, tpu.core_type = #tpu.core_type<sc_scalar_subcore>, window_params = []} {
    return
  }
}

module attributes {stable_mosaic.version = 11 : i64} {
  func.func @_gconv_kernel(%arg0: i32, %arg1: memref<1xf32, #tpu.memory_space<smem>>, %arg2: memref<128x128xbf16, #tpu.memory_space<any>>, %arg3: memref<128x128xbf16, #tpu.memory_space<vmem>>, %arg4: memref<128x128xf32, #tpu.memory_space<vmem>>, %arg5: memref<128x128xbf16, #tpu.memory_space<vmem>>, %arg6: memref<1x128xf32, #tpu.memory_space<vmem>>, %arg7: memref<1x128xf32, #tpu.memory_space<vmem>>, %arg8: memref<1x128xf32, #tpu.memory_space<vmem>>, %arg9: memref<128x128xbf16, #tpu.memory_space<vmem>>, %arg10: memref<1x128xf32, #tpu.memory_space<vmem>>, %arg11: memref<1x128xf32, #tpu.memory_space<vmem>>, %arg12: memref<1x128xf32, #tpu.memory_space<vmem>>, %arg13: memref<128x128xbf16, #tpu.memory_space<vmem>>, %arg14: memref<1x128xf32, #tpu.memory_space<vmem>>, %arg15: memref<1x128xf32, #tpu.memory_space<vmem>>, %arg16: memref<1x128xf32, #tpu.memory_space<vmem>>, %arg17: memref<128x128xbf16, #tpu.memory_space<vmem>>, %arg18: memref<1x128xf32, #tpu.memory_space<vmem>>, %arg19: memref<1x128xf32, #tpu.memory_space<vmem>>, %arg20: memref<1x128xf32, #tpu.memory_space<vmem>>, %arg21: memref<128x128xf32, #tpu.memory_space<vmem>>, %arg22: memref<128x128xbf16, #tpu.memory_space<vmem>>) attributes {dimension_semantics = [#tpu.dimension_semantics<arbitrary>], iteration_bounds = array<i64: 1>, scalar_prefetch = 0 : i64, scratch_operands = 1 : i64, tpu.core_type = #tpu.core_type<tc>, window_params = [{transform_indices = @transform_0, window_bounds = array<i64: 1>}, {}, {pipeline_mode = #tpu.pipeline_mode<synchronous>, transform_indices = @transform_2, window_bounds = array<i64: 128, 128>}, {pipeline_mode = #tpu.pipeline_mode<synchronous>, transform_indices = @transform_3, window_bounds = array<i64: 128, 128>}, {pipeline_mode = #tpu.pipeline_mode<synchronous>, transform_indices = @transform_4, window_bounds = array<i64: 128, 128>}, {pipeline_mode = #tpu.pipeline_mode<synchronous>, transform_indices = @transform_5, window_bounds = array<i64: 1, 128>}, {pipeline_mode = #tpu.pipeline_mode<synchronous>, transform_indices = @transform_6, window_bounds = array<i64: 1, 128>}, {pipeline_mode = #tpu.pipeline_mode<synchronous>, transform_indices = @transform_7, window_bounds = array<i64: 1, 128>}, {pipeline_mode = #tpu.pipeline_mode<synchronous>, transform_indices = @transform_8, window_bounds = array<i64: 128, 128>}, {pipeline_mode = #tpu.pipeline_mode<synchronous>, transform_indices = @transform_9, window_bounds = array<i64: 1, 128>}, {pipeline_mode = #tpu.pipeline_mode<synchronous>, transform_indices = @transform_10, window_bounds = array<i64: 1, 128>}, {pipeline_mode = #tpu.pipeline_mode<synchronous>, transform_indices = @transform_11, window_bounds = array<i64: 1, 128>}, {pipeline_mode = #tpu.pipeline_mode<synchronous>, transform_indices = @transform_12, window_bounds = array<i64: 128, 128>}, {pipeline_mode = #tpu.pipeline_mode<synchronous>, transform_indices = @transform_13, window_bounds = array<i64: 1, 128>}, {pipeline_mode = #tpu.pipeline_mode<synchronous>, transform_indices = @transform_14, window_bounds = array<i64: 1, 128>}, {pipeline_mode = #tpu.pipeline_mode<synchronous>, transform_indices = @transform_15, window_bounds = array<i64: 1, 128>}, {pipeline_mode = #tpu.pipeline_mode<synchronous>, transform_indices = @transform_16, window_bounds = array<i64: 128, 128>}, {pipeline_mode = #tpu.pipeline_mode<synchronous>, transform_indices = @transform_17, window_bounds = array<i64: 1, 128>}, {pipeline_mode = #tpu.pipeline_mode<synchronous>, transform_indices = @transform_18, window_bounds = array<i64: 1, 128>}, {pipeline_mode = #tpu.pipeline_mode<synchronous>, transform_indices = @transform_19, window_bounds = array<i64: 1, 128>}, {pipeline_mode = #tpu.pipeline_mode<synchronous>, transform_indices = @transform_20, window_bounds = array<i64: 128, 128>}]} {
    "tpu.region"() ({
      %154 = tpu.sem_alloc : memref<!tpu.dma_semaphore, #tpu.memory_space<semaphore_mem>>
      tpu.enqueue_dma source(%arg2 : memref<128x128xbf16, #tpu.memory_space<any>>) target(%arg22 : memref<128x128xbf16, #tpu.memory_space<vmem>>) target_semaphore(%154 : memref<!tpu.dma_semaphore, #tpu.memory_space<semaphore_mem>>)
      tpu.wait_dma2 semaphore(%154 : memref<!tpu.dma_semaphore, #tpu.memory_space<semaphore_mem>>) src(%arg2 : memref<128x128xbf16, #tpu.memory_space<any>>) dst(%arg22 : memref<128x128xbf16, #tpu.memory_space<vmem>>)
      tpu.yield
    }) : () -> ()
    %c0 = arith.constant 0 : index
    %c0_0 = arith.constant 0 : index
    %0 = vector.load %arg22[%c0, %c0_0] : memref<128x128xbf16, #tpu.memory_space<vmem>>, vector<128x128xbf16>
    %c0_1 = arith.constant 0 : index
    %1 = memref.load %arg1[%c0_1] : memref<1xf32, #tpu.memory_space<smem>>
    %c0_2 = arith.constant 0 : index
    %c0_3 = arith.constant 0 : index
    %2 = vector.load %arg4[%c0_2, %c0_3] : memref<128x128xf32, #tpu.memory_space<vmem>>, vector<128x128xf32>
    %c0_4 = arith.constant 0 : index
    %c0_5 = arith.constant 0 : index
    %3 = vector.load %arg3[%c0_4, %c0_5] : memref<128x128xbf16, #tpu.memory_space<vmem>>, vector<128x128xbf16>
    %cst = arith.constant dense<0.000000e+00> : vector<128x128xf32>
    %4 = tpu.matmul %0, %3, %cst {dimension_numbers = #tpu.dot_dimension_numbers<[1], [0], [0], [1], [0, 0, 1, 1], [], []>} : vector<128x128xbf16>, vector<128x128xbf16>, vector<128x128xf32> -> vector<128x128xf32>
    %5 = arith.truncf %4 : vector<128x128xf32> to vector<128x128xbf16>
    %c0_6 = arith.constant 0 : index
    %c0_7 = arith.constant 0 : index
    %6 = vector.load %arg5[%c0_6, %c0_7] : memref<128x128xbf16, #tpu.memory_space<vmem>>, vector<128x128xbf16>
    %c0_8 = arith.constant 0 : index
    %c0_9 = arith.constant 0 : index
    %7 = vector.load %arg13[%c0_8, %c0_9] : memref<128x128xbf16, #tpu.memory_space<vmem>>, vector<128x128xbf16>
    %8 = tpu.concatenate %6, %7 in 1 : vector<128x128xbf16>, vector<128x128xbf16> -> vector<128x256xbf16>
    %cst_10 = arith.constant dense<0.000000e+00> : vector<128x256xf32>
    %9 = tpu.matmul %5, %8, %cst_10 {dimension_numbers = #tpu.dot_dimension_numbers<[1], [0], [0], [1], [0, 0, 1, 1], [], []>} : vector<128x128xbf16>, vector<128x256xbf16>, vector<128x256xf32> -> vector<128x256xf32>
    %10 = vector.extract_strided_slice %9 {offsets = [0, 0], sizes = [128, 128], strides = [1, 1]} : vector<128x256xf32> to vector<128x128xf32>
    %c0_11 = arith.constant 0 : index
    %c0_12 = arith.constant 0 : index
    %11 = vector.load %arg6[%c0_11, %c0_12] : memref<1x128xf32, #tpu.memory_space<vmem>>, vector<1x128xf32>
    %12 = vector.broadcast %11 : vector<1x128xf32> to vector<128x128xf32>
    %13 = arith.addf %10, %12 : vector<128x128xf32>
    %c0_13 = arith.constant 0 : index
    %c0_14 = arith.constant 0 : index
    %14 = vector.load %arg7[%c0_13, %c0_14] : memref<1x128xf32, #tpu.memory_space<vmem>>, vector<1x128xf32>
    %c0_15 = arith.constant 0 : index
    %c0_16 = arith.constant 0 : index
    %15 = vector.load %arg8[%c0_15, %c0_16] : memref<1x128xf32, #tpu.memory_space<vmem>>, vector<1x128xf32>
    %cst_17 = arith.constant dense<0.000000e+00> : vector<128xf32>
    %16 = vector.multi_reduction <add>, %13, %cst_17 [0] : vector<128x128xf32> to vector<128xf32>
    %17 = vector.shape_cast %16 : vector<128xf32> to vector<1x128xf32>
    %cst_18 = arith.constant 1.280000e+02 : f32
    %18 = vector.broadcast %cst_18 : f32 to vector<1x128xf32>
    %19 = arith.divf %17, %18 : vector<1x128xf32>
    %20 = vector.broadcast %19 : vector<1x128xf32> to vector<128x128xf32>
    %21 = arith.subf %13, %20 : vector<128x128xf32>
    %22 = arith.mulf %21, %21 : vector<128x128xf32>
    %cst_19 = arith.constant dense<0.000000e+00> : vector<128xf32>
    %23 = vector.multi_reduction <add>, %22, %cst_19 [0] : vector<128x128xf32> to vector<128xf32>
    %24 = vector.shape_cast %23 : vector<128xf32> to vector<1x128xf32>
    %cst_20 = arith.constant 1.280000e+02 : f32
    %25 = vector.broadcast %cst_20 : f32 to vector<1x128xf32>
    %26 = arith.divf %24, %25 : vector<1x128xf32>
    %cst_21 = arith.constant 9.99999974E-6 : f32
    %27 = vector.broadcast %cst_21 : f32 to vector<1x128xf32>
    %28 = arith.addf %26, %27 : vector<1x128xf32>
    %29 = math.rsqrt %28 : vector<1x128xf32>
    %30 = vector.broadcast %29 : vector<1x128xf32> to vector<128x128xf32>
    %31 = arith.mulf %21, %30 : vector<128x128xf32>
    %32 = vector.broadcast %14 : vector<1x128xf32> to vector<128x128xf32>
    %33 = arith.mulf %31, %32 : vector<128x128xf32>
    %34 = vector.broadcast %15 : vector<1x128xf32> to vector<128x128xf32>
    %35 = arith.addf %33, %34 : vector<128x128xf32>
    %cst_22 = arith.constant 0.000000e+00 : f32
    %36 = vector.broadcast %cst_22 : f32 to vector<128x128xf32>
    %37 = arith.cmpf oge, %35, %36 : vector<128x128xf32>
    %38 = vector.broadcast %1 : f32 to vector<128x128xf32>
    %39 = arith.mulf %38, %35 : vector<128x128xf32>
    %40 = arith.select %37, %35, %39 : vector<128x128xi1>, vector<128x128xf32>
    %41 = vector.extract_strided_slice %9 {offsets = [0, 128], sizes = [128, 128], strides = [1, 1]} : vector<128x256xf32> to vector<128x128xf32>
    %c0_23 = arith.constant 0 : index
    %c0_24 = arith.constant 0 : index
    %42 = vector.load %arg14[%c0_23, %c0_24] : memref<1x128xf32, #tpu.memory_space<vmem>>, vector<1x128xf32>
    %43 = vector.broadcast %42 : vector<1x128xf32> to vector<128x128xf32>
    %44 = arith.addf %41, %43 : vector<128x128xf32>
    %c0_25 = arith.constant 0 : index
    %c0_26 = arith.constant 0 : index
    %45 = vector.load %arg15[%c0_25, %c0_26] : memref<1x128xf32, #tpu.memory_space<vmem>>, vector<1x128xf32>
    %c0_27 = arith.constant 0 : index
    %c0_28 = arith.constant 0 : index
    %46 = vector.load %arg16[%c0_27, %c0_28] : memref<1x128xf32, #tpu.memory_space<vmem>>, vector<1x128xf32>
    %cst_29 = arith.constant dense<0.000000e+00> : vector<128xf32>
    %47 = vector.multi_reduction <add>, %44, %cst_29 [0] : vector<128x128xf32> to vector<128xf32>
    %48 = vector.shape_cast %47 : vector<128xf32> to vector<1x128xf32>
    %cst_30 = arith.constant 1.280000e+02 : f32
    %49 = vector.broadcast %cst_30 : f32 to vector<1x128xf32>
    %50 = arith.divf %48, %49 : vector<1x128xf32>
    %51 = vector.broadcast %50 : vector<1x128xf32> to vector<128x128xf32>
    %52 = arith.subf %44, %51 : vector<128x128xf32>
    %53 = arith.mulf %52, %52 : vector<128x128xf32>
    %cst_31 = arith.constant dense<0.000000e+00> : vector<128xf32>
    %54 = vector.multi_reduction <add>, %53, %cst_31 [0] : vector<128x128xf32> to vector<128xf32>
    %55 = vector.shape_cast %54 : vector<128xf32> to vector<1x128xf32>
    %cst_32 = arith.constant 1.280000e+02 : f32
    %56 = vector.broadcast %cst_32 : f32 to vector<1x128xf32>
    %57 = arith.divf %55, %56 : vector<1x128xf32>
    %cst_33 = arith.constant 9.99999974E-6 : f32
    %58 = vector.broadcast %cst_33 : f32 to vector<1x128xf32>
    %59 = arith.addf %57, %58 : vector<1x128xf32>
    %60 = math.rsqrt %59 : vector<1x128xf32>
    %61 = vector.broadcast %60 : vector<1x128xf32> to vector<128x128xf32>
    %62 = arith.mulf %52, %61 : vector<128x128xf32>
    %63 = vector.broadcast %45 : vector<1x128xf32> to vector<128x128xf32>
    %64 = arith.mulf %62, %63 : vector<128x128xf32>
    %65 = vector.broadcast %46 : vector<1x128xf32> to vector<128x128xf32>
    %66 = arith.addf %64, %65 : vector<128x128xf32>
    %cst_34 = arith.constant 0.000000e+00 : f32
    %67 = vector.broadcast %cst_34 : f32 to vector<128x128xf32>
    %68 = arith.cmpf oge, %66, %67 : vector<128x128xf32>
    %69 = vector.broadcast %1 : f32 to vector<128x128xf32>
    %70 = arith.mulf %69, %66 : vector<128x128xf32>
    %71 = arith.select %68, %66, %70 : vector<128x128xi1>, vector<128x128xf32>
    %72 = arith.truncf %40 : vector<128x128xf32> to vector<128x128xbf16>
    %c0_35 = arith.constant 0 : index
    %c0_36 = arith.constant 0 : index
    %73 = vector.load %arg9[%c0_35, %c0_36] : memref<128x128xbf16, #tpu.memory_space<vmem>>, vector<128x128xbf16>
    %cst_37 = arith.constant dense<0.000000e+00> : vector<128x128xf32>
    %74 = tpu.matmul %72, %73, %cst_37 {dimension_numbers = #tpu.dot_dimension_numbers<[1], [0], [0], [1], [0, 0, 1, 1], [], []>} : vector<128x128xbf16>, vector<128x128xbf16>, vector<128x128xf32> -> vector<128x128xf32>
    %75 = arith.truncf %74 : vector<128x128xf32> to vector<128x128xbf16>
    %76 = arith.truncf %71 : vector<128x128xf32> to vector<128x128xbf16>
    %c0_38 = arith.constant 0 : index
    %c0_39 = arith.constant 0 : index
    %77 = vector.load %arg17[%c0_38, %c0_39] : memref<128x128xbf16, #tpu.memory_space<vmem>>, vector<128x128xbf16>
    %cst_40 = arith.constant dense<0.000000e+00> : vector<128x128xf32>
    %78 = tpu.matmul %76, %77, %cst_40 {dimension_numbers = #tpu.dot_dimension_numbers<[1], [0], [0], [1], [0, 0, 1, 1], [], []>} : vector<128x128xbf16>, vector<128x128xbf16>, vector<128x128xf32> -> vector<128x128xf32>
    %79 = arith.truncf %78 : vector<128x128xf32> to vector<128x128xbf16>
    %80 = tpu.concatenate %75, %79 in 1 : vector<128x128xbf16>, vector<128x128xbf16> -> vector<128x256xbf16>
    %cst_41 = arith.constant dense<0.000000e+00> : vector<128x256xf32>
    %81 = tpu.matmul %0, %80, %cst_41 {dimension_numbers = #tpu.dot_dimension_numbers<[1], [0], [0], [1], [0, 0, 1, 1], [], []>} : vector<128x128xbf16>, vector<128x256xbf16>, vector<128x256xf32> -> vector<128x256xf32>
    %82 = vector.extract_strided_slice %81 {offsets = [0, 0], sizes = [128, 128], strides = [1, 1]} : vector<128x256xf32> to vector<128x128xf32>
    %c0_42 = arith.constant 0 : index
    %c0_43 = arith.constant 0 : index
    %83 = vector.load %arg10[%c0_42, %c0_43] : memref<1x128xf32, #tpu.memory_space<vmem>>, vector<1x128xf32>
    %84 = vector.broadcast %83 : vector<1x128xf32> to vector<128x128xf32>
    %85 = arith.addf %82, %84 : vector<128x128xf32>
    %c0_44 = arith.constant 0 : index
    %c0_45 = arith.constant 0 : index
    %86 = vector.load %arg11[%c0_44, %c0_45] : memref<1x128xf32, #tpu.memory_space<vmem>>, vector<1x128xf32>
    %c0_46 = arith.constant 0 : index
    %c0_47 = arith.constant 0 : index
    %87 = vector.load %arg12[%c0_46, %c0_47] : memref<1x128xf32, #tpu.memory_space<vmem>>, vector<1x128xf32>
    %cst_48 = arith.constant dense<0.000000e+00> : vector<128xf32>
    %88 = vector.multi_reduction <add>, %85, %cst_48 [0] : vector<128x128xf32> to vector<128xf32>
    %89 = vector.shape_cast %88 : vector<128xf32> to vector<1x128xf32>
    %cst_49 = arith.constant 1.280000e+02 : f32
    %90 = vector.broadcast %cst_49 : f32 to vector<1x128xf32>
    %91 = arith.divf %89, %90 : vector<1x128xf32>
    %92 = vector.broadcast %91 : vector<1x128xf32> to vector<128x128xf32>
    %93 = arith.subf %85, %92 : vector<128x128xf32>
    %94 = arith.mulf %93, %93 : vector<128x128xf32>
    %cst_50 = arith.constant dense<0.000000e+00> : vector<128xf32>
    %95 = vector.multi_reduction <add>, %94, %cst_50 [0] : vector<128x128xf32> to vector<128xf32>
    %96 = vector.shape_cast %95 : vector<128xf32> to vector<1x128xf32>
    %cst_51 = arith.constant 1.280000e+02 : f32
    %97 = vector.broadcast %cst_51 : f32 to vector<1x128xf32>
    %98 = arith.divf %96, %97 : vector<1x128xf32>
    %cst_52 = arith.constant 9.99999974E-6 : f32
    %99 = vector.broadcast %cst_52 : f32 to vector<1x128xf32>
    %100 = arith.addf %98, %99 : vector<1x128xf32>
    %101 = math.rsqrt %100 : vector<1x128xf32>
    %102 = vector.broadcast %101 : vector<1x128xf32> to vector<128x128xf32>
    %103 = arith.mulf %93, %102 : vector<128x128xf32>
    %104 = vector.broadcast %86 : vector<1x128xf32> to vector<128x128xf32>
    %105 = arith.mulf %103, %104 : vector<128x128xf32>
    %106 = vector.broadcast %87 : vector<1x128xf32> to vector<128x128xf32>
    %107 = arith.addf %105, %106 : vector<128x128xf32>
    %cst_53 = arith.constant 0.000000e+00 : f32
    %108 = vector.broadcast %cst_53 : f32 to vector<128x128xf32>
    %109 = arith.cmpf oge, %107, %108 : vector<128x128xf32>
    %110 = vector.broadcast %1 : f32 to vector<128x128xf32>
    %111 = arith.mulf %110, %107 : vector<128x128xf32>
    %112 = arith.select %109, %107, %111 : vector<128x128xi1>, vector<128x128xf32>
    %113 = vector.extract_strided_slice %81 {offsets = [0, 128], sizes = [128, 128], strides = [1, 1]} : vector<128x256xf32> to vector<128x128xf32>
    %c0_54 = arith.constant 0 : index
    %c0_55 = arith.constant 0 : index
    %114 = vector.load %arg18[%c0_54, %c0_55] : memref<1x128xf32, #tpu.memory_space<vmem>>, vector<1x128xf32>
    %115 = vector.broadcast %114 : vector<1x128xf32> to vector<128x128xf32>
    %116 = arith.addf %113, %115 : vector<128x128xf32>
    %c0_56 = arith.constant 0 : index
    %c0_57 = arith.constant 0 : index
    %117 = vector.load %arg19[%c0_56, %c0_57] : memref<1x128xf32, #tpu.memory_space<vmem>>, vector<1x128xf32>
    %c0_58 = arith.constant 0 : index
    %c0_59 = arith.constant 0 : index
    %118 = vector.load %arg20[%c0_58, %c0_59] : memref<1x128xf32, #tpu.memory_space<vmem>>, vector<1x128xf32>
    %cst_60 = arith.constant dense<0.000000e+00> : vector<128xf32>
    %119 = vector.multi_reduction <add>, %116, %cst_60 [0] : vector<128x128xf32> to vector<128xf32>
    %120 = vector.shape_cast %119 : vector<128xf32> to vector<1x128xf32>
    %cst_61 = arith.constant 1.280000e+02 : f32
    %121 = vector.broadcast %cst_61 : f32 to vector<1x128xf32>
    %122 = arith.divf %120, %121 : vector<1x128xf32>
    %123 = vector.broadcast %122 : vector<1x128xf32> to vector<128x128xf32>
    %124 = arith.subf %116, %123 : vector<128x128xf32>
    %125 = arith.mulf %124, %124 : vector<128x128xf32>
    %cst_62 = arith.constant dense<0.000000e+00> : vector<128xf32>
    %126 = vector.multi_reduction <add>, %125, %cst_62 [0] : vector<128x128xf32> to vector<128xf32>
    %127 = vector.shape_cast %126 : vector<128xf32> to vector<1x128xf32>
    %cst_63 = arith.constant 1.280000e+02 : f32
    %128 = vector.broadcast %cst_63 : f32 to vector<1x128xf32>
    %129 = arith.divf %127, %128 : vector<1x128xf32>
    %cst_64 = arith.constant 9.99999974E-6 : f32
    %130 = vector.broadcast %cst_64 : f32 to vector<1x128xf32>
    %131 = arith.addf %129, %130 : vector<1x128xf32>
    %132 = math.rsqrt %131 : vector<1x128xf32>
    %133 = vector.broadcast %132 : vector<1x128xf32> to vector<128x128xf32>
    %134 = arith.mulf %124, %133 : vector<128x128xf32>
    %135 = vector.broadcast %117 : vector<1x128xf32> to vector<128x128xf32>
    %136 = arith.mulf %134, %135 : vector<128x128xf32>
    %137 = vector.broadcast %118 : vector<1x128xf32> to vector<128x128xf32>
    %138 = arith.addf %136, %137 : vector<128x128xf32>
    %cst_65 = arith.constant 0.000000e+00 : f32
    %139 = vector.broadcast %cst_65 : f32 to vector<128x128xf32>
    %140 = arith.cmpf oge, %138, %139 : vector<128x128xf32>
    %141 = vector.broadcast %1 : f32 to vector<128x128xf32>
    %142 = arith.mulf %141, %138 : vector<128x128xf32>
    %143 = arith.select %140, %138, %142 : vector<128x128xi1>, vector<128x128xf32>
    %144 = vector.extract_strided_slice %2 {offsets = [0, 0], sizes = [128, 1], strides = [1, 1]} : vector<128x128xf32> to vector<128x1xf32>
    %145 = vector.broadcast %144 : vector<128x1xf32> to vector<128x128xf32>
    %146 = arith.mulf %145, %112 : vector<128x128xf32>
    %c0_66 = arith.constant 0 : index
    %c0_67 = arith.constant 0 : index
    %147 = vector.load %arg21[%c0_66, %c0_67] : memref<128x128xf32, #tpu.memory_space<vmem>>, vector<128x128xf32>
    tpu.vector_store %arg21[%c0_66, %c0_67], %146 {strides = array<i32>} : memref<128x128xf32, #tpu.memory_space<vmem>>, vector<128x128xf32>,
    %c0_68 = arith.constant 0 : index
    %c0_69 = arith.constant 0 : index
    %148 = vector.load %arg21[%c0_68, %c0_69] : memref<128x128xf32, #tpu.memory_space<vmem>>, vector<128x128xf32>
    %149 = vector.extract_strided_slice %2 {offsets = [0, 1], sizes = [128, 1], strides = [1, 1]} : vector<128x128xf32> to vector<128x1xf32>
    %150 = vector.broadcast %149 : vector<128x1xf32> to vector<128x128xf32>
    %151 = arith.mulf %150, %143 : vector<128x128xf32>
    %152 = arith.addf %148, %151 : vector<128x128xf32>
    %c0_70 = arith.constant 0 : index
    %c0_71 = arith.constant 0 : index
    %153 = vector.load %arg21[%c0_70, %c0_71] : memref<128x128xf32, #tpu.memory_space<vmem>>, vector<128x128xf32>
    tpu.vector_store %arg21[%c0_70, %c0_71], %152 {strides = array<i32>} : memref<128x128xf32, #tpu.memory_space<vmem>>, vector<128x128xf32>,
    return
  }
  func.func @transform_0(%arg0: i32) -> i32 {
    %c0_i32 = arith.constant 0 : i32
    %c0_i32_0 = arith.constant 0 : i32
    return %c0_i32 : i32
  }
  func.func @transform_2(%arg0: i32) -> (i32, i32) {
    %c0_i32 = arith.constant 0 : i32
    %c0_i32_0 = arith.constant 0 : i32
    %c0_i32_1 = arith.constant 0 : i32
    return %c0_i32, %c0_i32_0 : i32, i32
  }
  func.func @transform_3(%arg0: i32) -> (i32, i32) {
    %c0_i32 = arith.constant 0 : i32
    %c0_i32_0 = arith.constant 0 : i32
    %c0_i32_1 = arith.constant 0 : i32
    return %c0_i32, %c0_i32_0 : i32, i32
  }
  func.func @transform_4(%arg0: i32) -> (i32, i32) {
    %c0_i32 = arith.constant 0 : i32
    %c0_i32_0 = arith.constant 0 : i32
    %c0_i32_1 = arith.constant 0 : i32
    return %c0_i32, %c0_i32_0 : i32, i32
  }
  func.func @transform_5(%arg0: i32) -> (i32, i32) {
    %c0_i32 = arith.constant 0 : i32
    %c0_i32_0 = arith.constant 0 : i32
    %c0_i32_1 = arith.constant 0 : i32
    return %c0_i32, %c0_i32_0 : i32, i32
  }
  func.func @transform_6(%arg0: i32) -> (i32, i32) {
    %c0_i32 = arith.constant 0 : i32
    %c0_i32_0 = arith.constant 0 : i32
    %c0_i32_1 = arith.constant 0 : i32
    return %c0_i32, %c0_i32_0 : i32, i32
  }
  func.func @transform_7(%arg0: i32) -> (i32, i32) {
    %c0_i32 = arith.constant 0 : i32
    %c0_i32_0 = arith.constant 0 : i32
    %c0_i32_1 = arith.constant 0 : i32
    return %c0_i32, %c0_i32_0 : i32, i32
  }
  func.func @transform_8(%arg0: i32) -> (i32, i32) {
    %c0_i32 = arith.constant 0 : i32
    %c0_i32_0 = arith.constant 0 : i32
    %c0_i32_1 = arith.constant 0 : i32
    return %c0_i32, %c0_i32_0 : i32, i32
  }
  func.func @transform_9(%arg0: i32) -> (i32, i32) {
    %c0_i32 = arith.constant 0 : i32
    %c0_i32_0 = arith.constant 0 : i32
    %c0_i32_1 = arith.constant 0 : i32
    return %c0_i32, %c0_i32_0 : i32, i32
  }
  func.func @transform_10(%arg0: i32) -> (i32, i32) {
    %c0_i32 = arith.constant 0 : i32
    %c0_i32_0 = arith.constant 0 : i32
    %c0_i32_1 = arith.constant 0 : i32
    return %c0_i32, %c0_i32_0 : i32, i32
  }
  func.func @transform_11(%arg0: i32) -> (i32, i32) {
    %c0_i32 = arith.constant 0 : i32
    %c0_i32_0 = arith.constant 0 : i32
    %c0_i32_1 = arith.constant 0 : i32
    return %c0_i32, %c0_i32_0 : i32, i32
  }
  func.func @transform_12(%arg0: i32) -> (i32, i32) {
    %c0_i32 = arith.constant 0 : i32
    %c0_i32_0 = arith.constant 0 : i32
    %c0_i32_1 = arith.constant 0 : i32
    return %c0_i32, %c0_i32_0 : i32, i32
  }
  func.func @transform_13(%arg0: i32) -> (i32, i32) {
    %c0_i32 = arith.constant 0 : i32
    %c0_i32_0 = arith.constant 0 : i32
    %c0_i32_1 = arith.constant 0 : i32
    return %c0_i32, %c0_i32_0 : i32, i32
  }
  func.func @transform_14(%arg0: i32) -> (i32, i32) {
    %c0_i32 = arith.constant 0 : i32
    %c0_i32_0 = arith.constant 0 : i32
    %c0_i32_1 = arith.constant 0 : i32
    return %c0_i32, %c0_i32_0 : i32, i32
  }
  func.func @transform_15(%arg0: i32) -> (i32, i32) {
    %c0_i32 = arith.constant 0 : i32
    %c0_i32_0 = arith.constant 0 : i32
    %c0_i32_1 = arith.constant 0 : i32
    return %c0_i32, %c0_i32_0 : i32, i32
  }
  func.func @transform_16(%arg0: i32) -> (i32, i32) {
    %c0_i32 = arith.constant 0 : i32
    %c0_i32_0 = arith.constant 0 : i32
    %c0_i32_1 = arith.constant 0 : i32
    return %c0_i32, %c0_i32_0 : i32, i32
  }
  func.func @transform_17(%arg0: i32) -> (i32, i32) {
    %c0_i32 = arith.constant 0 : i32
    %c0_i32_0 = arith.constant 0 : i32
    %c0_i32_1 = arith.constant 0 : i32
    return %c0_i32, %c0_i32_0 : i32, i32
  }
  func.func @transform_18(%arg0: i32) -> (i32, i32) {
    %c0_i32 = arith.constant 0 : i32
    %c0_i32_0 = arith.constant 0 : i32
    %c0_i32_1 = arith.constant 0 : i32
    return %c0_i32, %c0_i32_0 : i32, i32
  }
  func.func @transform_19(%arg0: i32) -> (i32, i32) {
    %c0_i32 = arith.constant 0 : i32
    %c0_i32_0 = arith.constant 0 : i32
    %c0_i32_1 = arith.constant 0 : i32
    return %c0_i32, %c0_i32_0 : i32, i32
  }
  func.func @transform_20(%arg0: i32) -> (i32, i32) {
    %c0_i32 = arith.constant 0 : i32
    %c0_i32_0 = arith.constant 0 : i32
    %c0_i32_1 = arith.constant 0 : i32
    return %c0_i32, %c0_i32_0 : i32, i32
  }
}

</mosaic_0001>

<bundles_post_ra>
// kernel: gconv_forward.1
= control target key start
LH: loop header
LB: loop body
LE: loop exit
PB: predicated region body
PF: predicated region fallthrough
CT: control target
= control target key end

     0   :  { %s3850_s0 = inlined_call_operand.<no memory space> [shape: f32[1], index: 0, kind: input, shape index: {}]   ;;  %s3851_s1 = inlined_call_operand.vmem [shape: bf16[128,128], index: 1, kind: input, shape index: {}]   ;;  %s3852_s2 = inlined_call_operand.vmem [shape: bf16[128,128], index: 2, kind: input, shape index: {}]   ;;  %s3853_s3 = inlined_call_operand.vmem [shape: f32[128,128], index: 3, kind: input, shape index: {}]   ;;  %s3854_s4 = inlined_call_operand.vmem [shape: bf16[128,128], index: 4, kind: input, shape index: {}]   ;;  %s3855_s5 = inlined_call_operand.vmem [shape: f32[1,128], index: 5, kind: input, shape index: {}, may-alias: {5,7,9,11,13,15,17,19}]   ;;  %s3856_s6 = inlined_call_operand.vmem [shape: f32[1,128], index: 6, kind: input, shape index: {}, may-alias: {6,10,14,18}]   ;;  %s3857_s7 = inlined_call_operand.vmem [shape: f32[1,128], index: 7, kind: input, shape index: {}, may-alias: {5,7,9,11,13,15,17,19}]   ;;  %s3858_s8 = inlined_call_operand.vmem [shape: bf16[128,128], index: 8, kind: input, shape index: {}]   ;;  %s3859_s9 = inlined_call_operand.vmem [shape: f32[1,128], index: 9, kind: input, shape index: {}, may-alias: {5,7,9,11,13,15,17,19}]   ;;  %s3860_s10 = inlined_call_operand.vmem [shape: f32[1,128], index: 10, kind: input, shape index: {}, may-alias: {6,10,14,18}]   ;;  %s3861_s11 = inlined_call_operand.vmem [shape: f32[1,128], index: 11, kind: input, shape index: {}, may-alias: {5,7,9,11,13,15,17,19}]   ;;  %s3862_s12 = inlined_call_operand.vmem [shape: bf16[128,128], index: 12, kind: input, shape index: {}]   ;;  %s3863_s13 = inlined_call_operand.vmem [shape: f32[1,128], index: 13, kind: input, shape index: {}, may-alias: {5,7,9,11,13,15,17,19}]   ;;  %s3864_s14 = inlined_call_operand.vmem [shape: f32[1,128], index: 14, kind: input, shape index: {}, may-alias: {6,10,14,18}]   ;;  %s3865_s15 = inlined_call_operand.vmem [shape: f32[1,128], index: 15, kind: input, shape index: {}, may-alias: {5,7,9,11,13,15,17,19}]   ;;  %s3866_s16 = inlined_call_operand.vmem [shape: bf16[128,128], index: 16, kind: input, shape index: {}]   ;;  %s3867_s17 = inlined_call_operand.vmem [shape: f32[1,128], index: 17, kind: input, shape index: {}, may-alias: {5,7,9,11,13,15,17,19}]   ;;  %s3868_s18 = inlined_call_operand.vmem [shape: f32[1,128], index: 18, kind: input, shape index: {}, may-alias: {6,10,14,18}]   ;;  %s3869_s19 = inlined_call_operand.vmem [shape: f32[1,128], index: 19, kind: input, shape index: {}, may-alias: {5,7,9,11,13,15,17,19}]   ;;  %s3870_s20 = inlined_call_operand.vmem [shape: f32[128,128], index: 20, kind: output, shape index: {}]  }
   0x1   :  { %3875 = sst [smem:[#allocation9_spill]] %s3850_s0 }
   0x2   :  { %3876 = sst [smem:[#allocation10_spill]] %s3851_s1 }
   0x3   :  { %3877 = sst [smem:[#allocation11_spill]] %s3852_s2 }
   0x4   :  { %3878 = sst [smem:[#allocation12_spill]] %s3853_s3 }
   0x5   :  { %3879 = sst [smem:[#allocation13_spill]] %s3854_s4 }
   0x6   :  { %s3880_s23 = sld [smem:[#allocation10_spill]] }
   0xc   :  { %v2503_v0 = vld [vmem:[%s3880_s23] sm:$0xff]  ;;  %v2508_v1 = vld [vmem:[%s3880_s23 + $0x8] sm:$0xff]  ;;  %v2513_v2 = vld [vmem:[%s3880_s23 + $0x10] sm:$0xff] }
   0xd   :  { %v2518_v3 = vld [vmem:[%s3880_s23 + $0x18] sm:$0xff]  ;;  %v2523_v4 = vld [vmem:[%s3880_s23 + $0x20] sm:$0xff]  ;;  %v2528_v5 = vld [vmem:[%s3880_s23 + $0x28] sm:$0xff] }
   0xe   :  { %v2533_v6 = vld [vmem:[%s3880_s23 + $0x30] sm:$0xff]  ;;  %v2538_v7 = vld [vmem:[%s3880_s23 + $0x38] sm:$0xff] }
   0xf   :  { %120 = vsyncadd [#allocation4], 1024 }
  0x10   :  { %2391 = dma.done.wait [#allocation4], 1024 }
  0x11   :  { %2392 = vsyncadd [#allocation4], 4294966272  ;;  %s3881_s25 = sld [smem:[#allocation11_spill]]  ;;  %2241 = vmatprep.mubr.bf16.mxu0 %v2503_v0  ;;  %v2351_v12 = vld [vmem:[%s3862_s12] sm:$0xff]   ;;  %s3882_s1 = sld [smem:[#allocation13_spill]]  ;;  %v2353_v15 = vld [vmem:[%s3862_s12 + $0x8] sm:$0xff]  }
  0x12   :  { %447 = vmatprep.subr.bf16.mxu1 %v2351_v12  ;;  %v2355_v17 = vld [vmem:[%s3862_s12 + $0x10] sm:$0xff]   ;;  %v2357_v20 = vld [vmem:[%s3862_s12 + $0x18] sm:$0xff]   ;;  %v2359_v23 = vld [vmem:[%s3862_s12 + $0x20] sm:$0xff]   ;;  %v2393_v32 = vmov 0  }
  0x13   :  { %v2361_v26 = vld [vmem:[%s3862_s12 + $0x28] sm:$0xff]   ;;  %v2363_v28 = vld [vmem:[%s3862_s12 + $0x30] sm:$0xff]   ;;  %v2365_v30 = vld [vmem:[%s3862_s12 + $0x38] sm:$0xff]   ;;  %479 = vmatprep.mubr.bf16.mxu1 %v2393_v32  ;;  %2340 = vset.pattern.permute.xlu1 %v2393_v32 }
  0x14   :  { %2339 = vset.pattern.permute.xlu0 %v2393_v32  ;;  %v2634_v58 = vld [vmem:[%s3855_s5] ss:$0 sm:$0xff]  ;;  %s3884_s5 = sld [smem:[#allocation12_spill]] }
  0x15   :  { %v2639_v60 = vld [vmem:[%s3863_s13] ss:$0 sm:$0xff]  ;;  %s3883_s13 = sld [smem:[#allocation9_spill]] }
  0x16   :  { %v2367_v62 = vld [vmem:[%s3858_s8] sm:$0xff]  }
  0x17   :  { %v2343_v8 = vld [vmem:[%s3881_s25] sm:$0xff]   ;;  %v2344_v9 = vld [vmem:[%s3881_s25 + $0x8] sm:$0xff]   ;;  %v2345_v10 = vld [vmem:[%s3881_s25 + $0x10] sm:$0xff]  }
  0x18   :  { %2225 = vmatprep.subr.bf16.mxu0 %v2343_v8  ;;  %v2346_v11 = vld [vmem:[%s3881_s25 + $0x18] sm:$0xff]   ;;  %v2352_v13 = vld [vmem:[%s3882_s1] sm:$0xff]   ;;  %v2354_v16 = vld [vmem:[%s3882_s1 + $0x8] sm:$0xff]  }
  0x19   :  { %2226 = vmatpush3.bf16.msra.mxu0 %v2343_v8  ;;  %v2347_v14 = vld [vmem:[%s3881_s25 + $0x20] sm:$0xff]   ;;  %448 = vmatpush1.bf16.msra.mxu1 %v2352_v13  ;;  %v2348_v18 = vld [vmem:[%s3881_s25 + $0x28] sm:$0xff]   ;;  %v2356_v19 = vld [vmem:[%s3882_s1 + $0x10] sm:$0xff]  }
  0x1a   :  { %2227 = vmatprep.subr.bf16.mxu0 %v2344_v9  ;;  %449 = vmatprep.subr.bf16.mxu1 %v2353_v15  ;;  %v2349_v21 = vld [vmem:[%s3881_s25 + $0x30] sm:$0xff]   ;;  %v2358_v22 = vld [vmem:[%s3882_s1 + $0x18] sm:$0xff]   ;;  %v2360_v24 = vld [vmem:[%s3882_s1 + $0x20] sm:$0xff]  }
  0x1b   :  { %v2350_v25 = vld [vmem:[%s3881_s25 + $0x38] sm:$0xff]   ;;  %v2362_v27 = vld [vmem:[%s3882_s1 + $0x28] sm:$0xff]   ;;  %v2364_v29 = vld [vmem:[%s3882_s1 + $0x30] sm:$0xff]  }
  0x1c   :  { %v2366_v31 = vld [vmem:[%s3882_s1 + $0x38] sm:$0xff]  }
  0x1d   :  { %2228 = vmatpush3.bf16.msra.mxu0 %v2344_v9  ;;  %450 = vmatpush1.bf16.msra.mxu1 %v2354_v16 }
  0x1e   :  { %2229 = vmatprep.subr.bf16.mxu0 %v2345_v10  ;;  %451 = vmatprep.subr.bf16.mxu1 %v2355_v17 }
  0x21   :  { %2230 = vmatpush3.bf16.msra.mxu0 %v2345_v10  ;;  %452 = vmatpush1.bf16.msra.mxu1 %v2356_v19 }
  0x22   :  { %2231 = vmatprep.subr.bf16.mxu0 %v2346_v11  ;;  %453 = vmatprep.subr.bf16.mxu1 %v2357_v20  ;;  %v2369_v20 = vld [vmem:[%s3858_s8 + $0x10] sm:$0xff]  }
  0x25   :  { %2232 = vmatpush3.bf16.msra.mxu0 %v2346_v11  ;;  %454 = vmatpush1.bf16.msra.mxu1 %v2358_v22 }
  0x26   :  { %2233 = vmatprep.subr.bf16.mxu0 %v2347_v14  ;;  %455 = vmatprep.subr.bf16.mxu1 %v2359_v23 }
  0x29   :  { %2234 = vmatpush3.bf16.msra.mxu0 %v2347_v14  ;;  %456 = vmatpush1.bf16.msra.mxu1 %v2360_v24  ;;  %v2368_v14 = vld [vmem:[%s3858_s8 + $0x8] sm:$0xff]  }
  0x2a   :  { %2235 = vmatprep.subr.bf16.mxu0 %v2348_v18  ;;  %457 = vmatprep.subr.bf16.mxu1 %v2361_v26 }
  0x2d   :  { %2236 = vmatpush3.bf16.msra.mxu0 %v2348_v18  ;;  %458 = vmatpush1.bf16.msra.mxu1 %v2362_v27 }
  0x2e   :  { %2237 = vmatprep.subr.bf16.mxu0 %v2349_v21  ;;  %459 = vmatprep.subr.bf16.mxu1 %v2363_v28  ;;  %v2370_v28 = vld [vmem:[%s3858_s8 + $0x18] sm:$0xff]  }
  0x31   :  { %2238 = vmatpush3.bf16.msra.mxu0 %v2349_v21  ;;  %460 = vmatpush1.bf16.msra.mxu1 %v2364_v29 }
  0x32   :  { %2239 = vmatprep.subr.bf16.mxu0 %v2350_v25  ;;  %461 = vmatprep.subr.bf16.mxu1 %v2365_v30 }
  0x35   :  { %2240 = vmatpush3.bf16.msra.mxu0 %v2350_v25  ;;  %462 = vmatpush1.bf16.msra.mxu1 %v2366_v31 }
  0x36   :  { %2257 = vmatprep.subr.bf16.mxu0 %v2367_v62 }
  0x38   :  { %2242 = vmatmul.mubr.bf16.vlgmr.msra.gmra.mrb[0].mxu0 %v2508_v1 }
  0x39   :  { %2245 = vmatprep.mubr.bf16.mxu0 %v2513_v2  ;;  %2258 = vmatpush3.bf16.msra.mxu0 %v2367_v62 }
  0x3a   :  { %2259 = vmatprep.subr.bf16.mxu0 %v2368_v14 }
  0x3d   :  { %2260 = vmatpush3.bf16.msra.mxu0 %v2368_v14 }
  0x3e   :  { %2261 = vmatprep.subr.bf16.mxu0 %v2369_v20 }
  0x40   :  { %2246 = vmatmul.mubr.bf16.gmra.mrb[4].mxu0 %v2518_v3 }
  0x41   :  { %2249 = vmatprep.mubr.bf16.mxu0 %v2523_v4  ;;  %2262 = vmatpush3.bf16.msra.mxu0 %v2369_v20 }
  0x42   :  { %2263 = vmatprep.subr.bf16.mxu0 %v2370_v28 }
  0x45   :  { %2264 = vmatpush3.bf16.msra.mxu0 %v2370_v28 }
  0x48   :  { %2250 = vmatmul.mubr.bf16.gmra.mrb[8].mxu0 %v2528_v5 }
  0x49   :  { %2253 = vmatprep.mubr.bf16.mxu0 %v2533_v6 }
  0x50   :  { %2254 = vmatmul.mubr.bf16.gmra.mrb[12].mxu0 %v2538_v7 }
 0x10b   :  { %v2243_v33 = vpop.f32.mrb[0].mxu0 }
 0x10c   :  { %v248_v34 = vpop.f32.mrb[1].mxu0 }
 0x10d   :  { %v2244_v35 = vpop.f32.mrb[2].mxu0 }
 0x10e   :  { %v312_v36 = vpack.c.bf16 %v2244_v35, %v2243_v33  ;;  %v251_v37 = vpop.f32.mrb[3].mxu0  ;;  %v2371_v35 = vld [vmem:[%s3858_s8 + $0x20] sm:$0xff]  }
 0x10f   :  { %v311_v38 = vpack.c.bf16 %v251_v37, %v248_v34  ;;  %2265 = vmatprep.subr.bf16.mxu0 %v2371_v35 }
 0x110   :  { %2266 = vmatpush3.bf16.msra.mxu0 %v2371_v35 }
 0x111   :  { %480 = vmatmul.mubr.bf16.vlgmr.msra.gmra.mrb[0].mxu1 %v311_v38 }
 0x112   :  { %489 = vmatprep.mubr.bf16.mxu1 %v2393_v32 }
 0x113   :  { %v2247_v39 = vpop.f32.mrb[4].mxu0 }
 0x114   :  { %v264_v40 = vpop.f32.mrb[5].mxu0 }
 0x115   :  { %v2248_v41 = vpop.f32.mrb[6].mxu0 }
 0x116   :  { %v314_v42 = vpack.c.bf16 %v2248_v41, %v2247_v39  ;;  %v267_v43 = vpop.f32.mrb[7].mxu0 }
 0x117   :  { %v313_v44 = vpack.c.bf16 %v267_v43, %v264_v40  ;;  %v2372_v43 = vld [vmem:[%s3858_s8 + $0x28] sm:$0xff]  }
 0x118   :  { %2267 = vmatprep.subr.bf16.mxu0 %v2372_v43 }
 0x119   :  { %490 = vmatmul.mubr.bf16.gmra.mrb[4].mxu1 %v312_v36  ;;  %2268 = vmatpush3.bf16.msra.mxu0 %v2372_v43 }
 0x11a   :  { %499 = vmatprep.mubr.bf16.mxu1 %v2393_v32 }
 0x11b   :  { %v2251_v45 = vpop.f32.mrb[8].mxu0 }
 0x11c   :  { %v280_v46 = vpop.f32.mrb[9].mxu0 }
 0x11d   :  { %v2252_v47 = vpop.f32.mrb[10].mxu0 }
 0x11e   :  { %v316_v48 = vpack.c.bf16 %v2252_v47, %v2251_v45  ;;  %v283_v49 = vpop.f32.mrb[11].mxu0 }
 0x11f   :  { %v315_v50 = vpack.c.bf16 %v283_v49, %v280_v46  ;;  %v2373_v49 = vld [vmem:[%s3858_s8 + $0x30] sm:$0xff]  }
 0x120   :  { %2269 = vmatprep.subr.bf16.mxu0 %v2373_v49 }
 0x121   :  { %500 = vmatmul.mubr.bf16.gmra.mrb[8].mxu1 %v313_v44  ;;  %2270 = vmatpush3.bf16.msra.mxu0 %v2373_v49 }
 0x122   :  { %509 = vmatprep.mubr.bf16.mxu1 %v2393_v32 }
 0x123   :  { %v2255_v51 = vpop.f32.mrb[12].mxu0 }
 0x124   :  { %v296_v52 = vpop.f32.mrb[13].mxu0 }
 0x125   :  { %v2256_v53 = vpop.f32.mrb[14].mxu0 }
 0x126   :  { %v318_v54 = vpack.c.bf16 %v2256_v53, %v2255_v51  ;;  %v299_v55 = vpop.f32.mrb[15].mxu0  ;;  %v2374_v53 = vld [vmem:[%s3858_s8 + $0x38] sm:$0xff]  }
 0x127   :  { %v317_v56 = vpack.c.bf16 %v299_v55, %v296_v52  ;;  %2271 = vmatprep.subr.bf16.mxu0 %v2374_v53 }
 0x128   :  { %2272 = vmatpush3.bf16.msra.mxu0 %v2374_v53 }
 0x129   :  { %510 = vmatmul.mubr.bf16.gmra.mrb[12].mxu1 %v314_v42 }
 0x12a   :  { %519 = vmatprep.mubr.bf16.mxu1 %v2393_v32 }
 0x131   :  { %520 = vmatmul.mubr.bf16.gmra.mrb[16].mxu1 %v315_v50 }
 0x132   :  { %529 = vmatprep.mubr.bf16.mxu1 %v2393_v32 }
 0x139   :  { %530 = vmatmul.mubr.bf16.gmra.mrb[20].mxu1 %v316_v48 }
 0x13a   :  { %539 = vmatprep.mubr.bf16.mxu1 %v2393_v32 }
 0x141   :  { %540 = vmatmul.mubr.bf16.gmra.mrb[24].mxu1 %v317_v56 }
 0x142   :  { %549 = vmatprep.mubr.bf16.mxu1 %v2393_v32 }
 0x149   :  { %550 = vmatmul.mubr.bf16.gmra.mrb[28].mxu1 %v318_v54 }
 0x14a   :  { %1390 = vmatprep.mubr.bf16.mxu1 %v2393_v32 }
 0x1e4   :  { %v481_v57 = vpop.f32.mrb[0].mxu1 }
 0x1e5   :  { %v483_v59 = vpop.f32.mrb[1].mxu1  ;;  %v2645_v63 = vadd.f32 %v2634_v58, %v481_v57 }
 0x1e6   :  { %v485_v61 = vpop.f32.mrb[2].mxu1  ;;  %v2651_v10 = vadd.f32 %v2639_v60, %v483_v59  ;;  %v2732_v59 = vld [vmem:[%s3866_s16] sm:$0xff]  }
 0x1e7   :  { %v2648_v8 = vadd.f32 %v2634_v58, %v485_v61  ;;  %v487_v9 = vpop.f32.mrb[3].mxu1  ;;  %2289 = vmatprep.subr.bf16.mxu0 %v2732_v59 }
 0x1e8   :  { %v2654_v11 = vadd.f32 %v2639_v60, %v487_v9 }
 0x1e9   :  { %v585_v12 = vadd.f32 %v2648_v8, %v2645_v63 }
 0x1ea   :  { %v798_v13 = vadd.f32 %v2654_v11, %v2651_v10 }
 0x1ec   :  { %v491_v15 = vpop.f32.mrb[4].mxu1 }
 0x1ed   :  { %v2664_v16 = vadd.f32 %v2634_v58, %v491_v15  ;;  %v493_v17 = vpop.f32.mrb[5].mxu1 }
 0x1ee   :  { %v2667_v18 = vadd.f32 %v2639_v60, %v493_v17  ;;  %v495_v19 = vpop.f32.mrb[6].mxu1 }
 0x1ef   :  { %v586_v21 = vadd.f32 %v585_v12, %v2664_v16  ;;  %v2674_v22 = vadd.f32 %v2634_v58, %v495_v19  ;;  %v497_v23 = vpop.f32.mrb[7].mxu1 }
 0x1f0   :  { %v799_v24 = vadd.f32 %v798_v13, %v2667_v18  ;;  %v2678_v25 = vadd.f32 %v2639_v60, %v497_v23 }
 0x1f1   :  { %v587_v26 = vadd.f32 %v586_v21, %v2674_v22 }
 0x1f2   :  { %v800_v27 = vadd.f32 %v799_v24, %v2678_v25 }
 0x1f4   :  { %v501_v29 = vpop.f32.mrb[8].mxu1 }
 0x1f5   :  { %v2686_v30 = vadd.f32 %v2634_v58, %v501_v29  ;;  %v503_v31 = vpop.f32.mrb[9].mxu1 }
 0x1f6   :  { %v2689_v33 = vadd.f32 %v2639_v60, %v503_v31  ;;  %v505_v34 = vpop.f32.mrb[10].mxu1 }
 0x1f7   :  { %v588_v36 = vadd.f32 %v587_v26, %v2686_v30  ;;  %v2696_v37 = vadd.f32 %v2634_v58, %v505_v34  ;;  %v507_v38 = vpop.f32.mrb[11].mxu1 }
 0x1f8   :  { %v801_v39 = vadd.f32 %v800_v27, %v2689_v33  ;;  %v2700_v40 = vadd.f32 %v2639_v60, %v507_v38 }
 0x1f9   :  { %v589_v41 = vadd.f32 %v588_v36, %v2696_v37 }
 0x1fa   :  { %v802_v42 = vadd.f32 %v801_v39, %v2700_v40 }
 0x1fc   :  { %v511_v44 = vpop.f32.mrb[12].mxu1 }
 0x1fd   :  { %v2708_v45 = vadd.f32 %v2634_v58, %v511_v44  ;;  %v513_v46 = vpop.f32.mrb[13].mxu1 }
 0x1fe   :  { %v2711_v47 = vadd.f32 %v2639_v60, %v513_v46  ;;  %v515_v48 = vpop.f32.mrb[14].mxu1 }
 0x1ff   :  { %v590_v50 = vadd.f32 %v589_v41, %v2708_v45  ;;  %v2718_v51 = vadd.f32 %v2634_v58, %v515_v48  ;;  %v517_v52 = vpop.f32.mrb[15].mxu1 }
 0x200   :  { %v803_v54 = vadd.f32 %v802_v42, %v2711_v47  ;;  %v2725_v55 = vadd.f32 %v2639_v60, %v517_v52 }
 0x201   :  { %v591_v56 = vadd.f32 %v590_v50, %v2718_v51 }
 0x202   :  { %v804_v57 = vadd.f32 %v803_v54, %v2725_v55 }
 0x204   :  { %v521_v61 = vpop.f32.mrb[16].mxu1 }
 0x205   :  { %v2735_v62 = vadd.f32 %v2634_v58, %v521_v61  ;;  %v523_v9 = vpop.f32.mrb[17].mxu1 }
 0x206   :  { %v2738_v12 = vadd.f32 %v2639_v60, %v523_v9  ;;  %v525_v13 = vpop.f32.mrb[18].mxu1 }
 0x207   :  { %v592_v14 = vadd.f32 %v591_v56, %v2735_v62  ;;  %v2743_v15 = vadd.f32 %v2634_v58, %v525_v13  ;;  %v527_v17 = vpop.f32.mrb[19].mxu1 }
 0x208   :  { %v805_v19 = vadd.f32 %v804_v57, %v2738_v12  ;;  %v2747_v20 = vadd.f32 %v2639_v60, %v527_v17 }
 0x209   :  { %v593_v21 = vadd.f32 %v592_v14, %v2743_v15 }
 0x20a   :  { %v806_v23 = vadd.f32 %v805_v19, %v2747_v20 }
 0x20c   :  { %v531_v24 = vpop.f32.mrb[20].mxu1 }
 0x20d   :  { %v577_v26 = vadd.f32 %v2634_v58, %v531_v24  ;;  %v533_v27 = vpop.f32.mrb[21].mxu1 }
 0x20e   :  { %v2753_v28 = vadd.f32 %v2639_v60, %v533_v27  ;;  %v535_v29 = vpop.f32.mrb[22].mxu1 }
 0x20f   :  { %v594_v31 = vadd.f32 %v593_v21, %v577_v26  ;;  %v578_v34 = vadd.f32 %v2634_v58, %v535_v29  ;;  %v537_v35 = vpop.f32.mrb[23].mxu1 }
 0x210   :  { %v807_v36 = vadd.f32 %v806_v23, %v2753_v28  ;;  %v2758_v38 = vadd.f32 %v2639_v60, %v537_v35 }
 0x211   :  { %v595_v39 = vadd.f32 %v594_v31, %v578_v34 }
 0x212   :  { %v808_v41 = vadd.f32 %v807_v36, %v2758_v38 }
 0x214   :  { %v541_v42 = vpop.f32.mrb[24].mxu1 }
 0x215   :  { %v579_v43 = vadd.f32 %v2634_v58, %v541_v42  ;;  %v543_v44 = vpop.f32.mrb[25].mxu1 }
 0x216   :  { %v2763_v46 = vadd.f32 %v2639_v60, %v543_v44  ;;  %v545_v48 = vpop.f32.mrb[26].mxu1 }
 0x217   :  { %v596_v49 = vadd.f32 %v595_v39, %v579_v43  ;;  %v580_v50 = vadd.f32 %v2634_v58, %v545_v48  ;;  %v547_v52 = vpop.f32.mrb[27].mxu1 }
 0x218   :  { %v809_v53 = vadd.f32 %v808_v41, %v2763_v46  ;;  %v2768_v54 = vadd.f32 %v2639_v60, %v547_v52 }
 0x219   :  { %v597_v56 = vadd.f32 %v596_v49, %v580_v50 }
 0x21a   :  { %v810_v57 = vadd.f32 %v809_v53, %v2768_v54 }
 0x21c   :  { %v551_v61 = vpop.f32.mrb[28].mxu1 }
 0x21d   :  { %v581_v9 = vadd.f32 %v2634_v58, %v551_v61  ;;  %v553_v13 = vpop.f32.mrb[29].mxu1 }
 0x21e   :  { %v794_v14 = vadd.f32 %v2639_v60, %v553_v13  ;;  %v555_v17 = vpop.f32.mrb[30].mxu1 }
 0x21f   :  { %v598_v19 = vadd.f32 %v597_v56, %v581_v9  ;;  %v582_v21 = vadd.f32 %v2634_v58, %v555_v17  ;;  %v557_v23 = vpop.f32.mrb[31].mxu1 }
 0x220   :  { %v811_v24 = vadd.f32 %v810_v57, %v794_v14  ;;  %v795_v27 = vadd.f32 %v2639_v60, %v557_v23 }
 0x221   :  { %v599_v29 = vadd.f32 %v598_v19, %v582_v21 }
 0x222   :  { %v812_v31 = vadd.f32 %v811_v24, %v795_v27 }
 0x223   :  { %v600_v35 = vrot.slane %v599_v29, 4 }
 0x224   :  { %v813_v36 = vrot.slane %v812_v31, 4 }
 0x225   :  { %v601_v39 = vadd.f32 %v600_v35, %v599_v29 }
 0x226   :  { %v814_v41 = vadd.f32 %v813_v36, %v812_v31 }
 0x227   :  { %v602_v42 = vrot.slane %v601_v39, 2 }
 0x228   :  { %v815_v44 = vrot.slane %v814_v41, 2 }
 0x229   :  { %v603_v48 = vadd.f32 %v602_v42, %v601_v39 }
 0x22a   :  { %v816_v49 = vadd.f32 %v815_v44, %v814_v41 }
 0x22b   :  { %v604_v52 = vrot.slane %v603_v48, 1 }
 0x22c   :  { %v817_v53 = vrot.slane %v816_v49, 1 }
 0x22d   :  { %v605_v61 = vadd.f32 %v604_v52, %v603_v48 }
 0x22e   :  { %v818_v13 = vadd.f32 %v817_v53, %v816_v49 }
 0x22f   :  { %v607_v56 = vmul.f32 0.0078125, %v605_v61 }
 0x231   :  { %v2776_v58 = vsub.f32 %v2645_v63, %v607_v56  ;;  %v2779_v60 = vsub.f32 %v2648_v8, %v607_v56  ;;  %v2782_v57 = vsub.f32 %v2664_v16, %v607_v56  ;;  %v2785_v17 = vsub.f32 %v2674_v22, %v607_v56 }
 0x232   :  { %v2788_v19 = vsub.f32 %v2686_v30, %v607_v56  ;;  %v2791_v23 = vsub.f32 %v2696_v37, %v607_v56  ;;  %v2794_v24 = vsub.f32 %v2708_v45, %v607_v56  ;;  %v2797_v63 = vsub.f32 %v2718_v51, %v607_v56 }
 0x233   :  { %v2800_v8 = vsub.f32 %v2735_v62, %v607_v56  ;;  %v2803_v16 = vsub.f32 %v2743_v15, %v607_v56  ;;  %v2805_v22 = vsub.f32 %v577_v26, %v607_v56  ;;  %v2807_v29 = vsub.f32 %v578_v34, %v607_v56 }
 0x234   :  { %v2809_v30 = vsub.f32 %v579_v43, %v607_v56  ;;  %v2811_v37 = vsub.f32 %v580_v50, %v607_v56  ;;  %v2813_v31 = vsub.f32 %v581_v9, %v607_v56  ;;  %v2815_v45 = vsub.f32 %v582_v21, %v607_v56 }
 0x235   :  { %v624_v51 = vmul.f32 %v2776_v58, %v2776_v58  ;;  %v625_v62 = vmul.f32 %v2779_v60, %v2779_v60  ;;  %v819_v15 = vmul.f32 0.0078125, %v818_v13  ;;  %v626_v26 = vmul.f32 %v2782_v57, %v2782_v57 }
 0x236   :  { %v627_v34 = vmul.f32 %v2785_v17, %v2785_v17  ;;  %v632_v13 = vmul.f32 %v2800_v8, %v2800_v8 }
 0x237   :  { %v640_v43 = vadd.f32 %v625_v62, %v624_v51  ;;  %v2826_v50 = vsub.f32 %v2651_v10, %v819_v15  ;;  %v2829_v9 = vsub.f32 %v2654_v11, %v819_v15  ;;  %v2832_v21 = vsub.f32 %v2667_v18, %v819_v15 }
 0x238   :  { %v2835_v35 = vsub.f32 %v2678_v25, %v819_v15  ;;  %v2838_v36 = vsub.f32 %v2689_v33, %v819_v15  ;;  %v2841_v39 = vsub.f32 %v2700_v40, %v819_v15  ;;  %v2844_v41 = vsub.f32 %v2711_v47, %v819_v15 }
 0x239   :  { %v641_v10 = vadd.f32 %v640_v43, %v626_v26  ;;  %v2847_v42 = vsub.f32 %v2725_v55, %v819_v15  ;;  %v2850_v11 = vsub.f32 %v2738_v12, %v819_v15  ;;  %v2853_v18 = vsub.f32 %v2747_v20, %v819_v15 }
 0x23a   :  { %v2856_v25 = vsub.f32 %v2753_v28, %v819_v15  ;;  %v2859_v33 = vsub.f32 %v2758_v38, %v819_v15  ;;  %v2862_v40 = vsub.f32 %v2763_v46, %v819_v15  ;;  %v2865_v47 = vsub.f32 %v2768_v54, %v819_v15 }
 0x23b   :  { %v628_v55 = vmul.f32 %v2788_v19, %v2788_v19  ;;  %v642_v12 = vadd.f32 %v641_v10, %v627_v34  ;;  %v2869_v44 = vsub.f32 %v794_v14, %v819_v15  ;;  %v2871_v20 = vsub.f32 %v795_v27, %v819_v15 }
 0x23c   :  { %v836_v28 = vmul.f32 %v2826_v50, %v2826_v50  ;;  %v837_v38 = vmul.f32 %v2829_v9, %v2829_v9  ;;  %v629_v46 = vmul.f32 %v2791_v23, %v2791_v23  ;;  %v630_v54 = vmul.f32 %v2794_v24, %v2794_v24 }
 0x23d   :  { %v643_v48 = vadd.f32 %v642_v12, %v628_v55  ;;  %v838_v14 = vmul.f32 %v2832_v21, %v2832_v21  ;;  %v631_v27 = vmul.f32 %v2797_v63, %v2797_v63  ;;  %v839_v61 = vmul.f32 %v2835_v35, %v2835_v35 }
 0x23e   :  { %v852_v52 = vadd.f32 %v837_v38, %v836_v28  ;;  %v840_v62 = vmul.f32 %v2838_v36, %v2838_v36  ;;  %v633_v26 = vmul.f32 %v2803_v16, %v2803_v16  ;;  %v841_v43 = vmul.f32 %v2841_v39, %v2841_v39 }
 0x23f   :  { %v644_v49 = vadd.f32 %v643_v48, %v629_v46  ;;  %v634_v55 = vmul.f32 %v2805_v22, %v2805_v22  ;;  %v842_v28 = vmul.f32 %v2844_v41, %v2844_v41  ;;  %v635_v46 = vmul.f32 %v2807_v29, %v2807_v29 }
 0x240   :  { %v853_v56 = vadd.f32 %v852_v52, %v838_v14  ;;  %v636_v14 = vmul.f32 %v2809_v30, %v2809_v30 }
 0x241   :  { %v645_v53 = vadd.f32 %v644_v49, %v630_v54  ;;  %v843_v54 = vmul.f32 %v2847_v42, %v2847_v42 }
 0x242   :  { %v854_v15 = vadd.f32 %v853_v56, %v839_v61  ;;  %v637_v61 = vmul.f32 %v2811_v37, %v2811_v37 }
 0x243   :  { %v646_v51 = vadd.f32 %v645_v53, %v631_v27  ;;  %v844_v27 = vmul.f32 %v2850_v11, %v2850_v11 }
 0x244   :  { %v855_v10 = vadd.f32 %v854_v15, %v840_v62  ;;  %v638_v62 = vmul.f32 %v2813_v31, %v2813_v31 }
 0x245   :  { %v647_v34 = vadd.f32 %v646_v51, %v632_v13  ;;  %v845_v13 = vmul.f32 %v2853_v18, %v2853_v18 }
 0x246   :  { %v856_v38 = vadd.f32 %v855_v10, %v841_v43  ;;  %v639_v43 = vmul.f32 %v2815_v45, %v2815_v45 }
 0x247   :  { %v648_v12 = vadd.f32 %v647_v34, %v633_v26  ;;  %v846_v26 = vmul.f32 %v2856_v25, %v2856_v25 }
 0x248   :  { %v857_v49 = vadd.f32 %v856_v38, %v842_v28  ;;  %v848_v38 = vmul.f32 %v2862_v40, %v2862_v40 }
 0x249   :  { %v649_v48 = vadd.f32 %v648_v12, %v634_v55  ;;  %v847_v55 = vmul.f32 %v2859_v33, %v2859_v33 }
 0x24a   :  { %v858_v53 = vadd.f32 %v857_v49, %v843_v54  ;;  %v849_v54 = vmul.f32 %v2865_v47, %v2865_v47 }
 0x24b   :  { %v650_v52 = vadd.f32 %v649_v48, %v635_v46 }
 0x24c   :  { %v859_v51 = vadd.f32 %v858_v53, %v844_v27 }
 0x24d   :  { %v651_v56 = vadd.f32 %v650_v52, %v636_v14  ;;  %v850_v52 = vmul.f32 %v2869_v44, %v2869_v44 }
 0x24e   :  { %v860_v34 = vadd.f32 %v859_v51, %v845_v13 }
 0x24f   :  { %v652_v15 = vadd.f32 %v651_v56, %v637_v61  ;;  %v851_v61 = vmul.f32 %v2871_v20, %v2871_v20 }
 0x250   :  { %v861_v12 = vadd.f32 %v860_v34, %v846_v26 }
 0x251   :  { %v653_v10 = vadd.f32 %v652_v15, %v638_v62 }
 0x252   :  { %v862_v46 = vadd.f32 %v861_v12, %v847_v55 }
 0x253   :  { %v654_v28 = vadd.f32 %v653_v10, %v639_v43 }
 0x254   :  { %v863_v49 = vadd.f32 %v862_v46, %v848_v38 }
 0x255   :  { %v655_v48 = vrot.slane %v654_v28, 4 }
 0x256   :  { %v864_v27 = vadd.f32 %v863_v49, %v849_v54  ;;  %v2932_v49 = vld [vmem:[%s3856_s6] ss:$0 sm:$0xff] }
 0x257   :  { %v656_v14 = vadd.f32 %v655_v48, %v654_v28 }
 0x258   :  { %v865_v56 = vadd.f32 %v864_v27, %v850_v52 }
 0x259   :  { %v657_v53 = vrot.slane %v656_v14, 2 }
 0x25a   :  { %v866_v51 = vadd.f32 %v865_v56, %v851_v61  ;;  %v2950_v56 = vld [vmem:[%s3857_s7] ss:$0 sm:$0xff] }
 0x25b   :  { %v658_v13 = vadd.f32 %v657_v53, %v656_v14  ;;  %v2937_v14 = vstv %s3883_s13 }
 0x25c   :  { %v867_v15 = vrot.slane %v866_v51, 4 }
 0x25d   :  { %v659_v62 = vrot.slane %v658_v13, 1 }
 0x25e   :  { %v868_v34 = vadd.f32 %v867_v15, %v866_v51 }
 0x25f   :  { %v660_v26 = vadd.f32 %v659_v62, %v658_v13 }
 0x260   :  { %v869_v10 = vrot.slane %v868_v34, 2 }
 0x261   :  { %v661_v43 = vmul.f32 0.0078125, %v660_v26 }
 0x262   :  { %v870_v12 = vadd.f32 %v869_v10, %v868_v34 }
 0x263   :  { %v662_v55 = vadd.f32 1e-05, %v661_v43 }
 0x264   :  { %v871_v28 = vrot.slane %v870_v12, 1 }
 0x265   :  { %2383 = vrsqrt.f32 %v662_v55 }
 0x266   :  { %v872_v38 = vadd.f32 %v871_v28, %v870_v12 }
 0x268   :  { %v873_v46 = vmul.f32 0.0078125, %v872_v38 }
 0x26a   :  { %v874_v48 = vadd.f32 1e-05, %v873_v46 }
 0x26c   :  { %2385 = vrsqrt.f32 %v874_v48 }
 0x26f   :  { %v2927_v54 = vpop.eup %2383 }
 0x270   :  { %v679_v52 = vmul.f32 %v2927_v54, %v2815_v45  ;;  %v664_v27 = vmul.f32 %v2927_v54, %v2776_v58  ;;  %v665_v53 = vmul.f32 %v2927_v54, %v2779_v60  ;;  %v666_v61 = vmul.f32 %v2927_v54, %v2782_v57 }
 0x271   :  { %v667_v13 = vmul.f32 %v2927_v54, %v2785_v17  ;;  %v668_v45 = vmul.f32 %v2927_v54, %v2788_v19  ;;  %v669_v58 = vmul.f32 %v2927_v54, %v2791_v23  ;;  %v670_v60 = vmul.f32 %v2927_v54, %v2794_v24 }
 0x272   :  { %v701_v51 = vmul.f32 %v2932_v49, %v679_v52  ;;  %v686_v57 = vmul.f32 %v2932_v49, %v664_v27  ;;  %v687_v62 = vmul.f32 %v2932_v49, %v665_v53  ;;  %v688_v15 = vmul.f32 %v2932_v49, %v666_v61  ;;  %v2988_v53 = vld [vmem:[%s3864_s14] ss:$0 sm:$0xff] }
 0x273   :  { %v689_v26 = vmul.f32 %v2932_v49, %v667_v13  ;;  %v690_v17 = vmul.f32 %v2932_v49, %v668_v45  ;;  %v691_v19 = vmul.f32 %v2932_v49, %v669_v58  ;;  %v671_v23 = vmul.f32 %v2927_v54, %v2797_v63 }
 0x274   :  { %v2970_v34 = vadd.f32 %v2950_v56, %v701_v51  ;;  %v708_v24 = vadd.f32 %v2950_v56, %v686_v57  ;;  %v709_v43 = vadd.f32 %v2950_v56, %v687_v62  ;;  %v710_v10 = vadd.f32 %v2950_v56, %v688_v15  ;;  %v2995_v57 = vld [vmem:[%s3865_s15] ss:$0 sm:$0xff] }
 0x275   :  { %v711_v55 = vadd.f32 %v2950_v56, %v689_v26  ;;  %v712_v12 = vadd.f32 %v2950_v56, %v690_v17  ;;  %v713_v28 = vadd.f32 %v2950_v56, %v691_v19  ;;  %v692_v38 = vmul.f32 %v2932_v49, %v670_v60  ;;  %v2376_v17 = vld [vmem:[%s3866_s16 + $0x8] sm:$0xff]  }
 0x276   :  { %vm724_vm0 = vcmp.ge.f32.partialorder %v708_v24, 0.0  ;;  %vm725_vm1 = vcmp.ge.f32.partialorder %v709_v43, 0.0  ;;  %v741_v63 = vmul.f32 %v2937_v14, %v708_v24  ;;  %v742_v46 = vmul.f32 %v2937_v14, %v709_v43  ;;  %v2983_v27 = vpop.eup %2385 }
 0x277   :  { %vm726_vm2 = vcmp.ge.f32.partialorder %v710_v10, 0.0  ;;  %vm727_vm3 = vcmp.ge.f32.partialorder %v711_v55, 0.0  ;;  %v743_v48 = vmul.f32 %v2937_v14, %v710_v10  ;;  %v744_v52 = vmul.f32 %v2937_v14, %v711_v55 }
 0x278   :  { %v757_v61 = vsel %vm724_vm0, %v708_v24, %v741_v63  ;;  %v758_v13 = vsel %vm725_vm1, %v709_v43, %v742_v46  ;;  %vm728_vm4 = vcmp.ge.f32.partialorder %v712_v12, 0.0  ;;  %vm729_vm5 = vcmp.ge.f32.partialorder %v713_v28, 0.0 }
 0x279   :  { %v891_v45 = vmul.f32 %v2983_v27, %v2871_v20  ;;  %v984_v58 = vpack.c.bf16 %v758_v13, %v757_v61  ;;  %v759_v60 = vsel %vm726_vm2, %v710_v10, %v743_v48  ;;  %v760_v51 = vsel %vm727_vm3, %v711_v55, %v744_v52 }
 0x27a   :  { %v985_v62 = vpack.c.bf16 %v760_v51, %v759_v60  ;;  %v745_v15 = vmul.f32 %v2937_v14, %v712_v12  ;;  %v746_v26 = vmul.f32 %v2937_v14, %v713_v28  ;;  %v693_v19 = vmul.f32 %v2932_v49, %v671_v23 }
 0x27b   :  { %v913_v20 = vmul.f32 %v2988_v53, %v891_v45  ;;  %2273 = vmatprep.mubr.bf16.mxu0 %v984_v58  ;;  %v714_v24 = vadd.f32 %v2950_v56, %v692_v38  ;;  %v672_v43 = vmul.f32 %v2927_v54, %v2800_v8  ;;  %v673_v10 = vmul.f32 %v2927_v54, %v2803_v16 }
 0x27c   :  { %2274 = vmatmul.mubr.bf16.vlgmr.msra.gmra.mrb[16].mxu0 %v985_v62  ;;  %v761_v55 = vsel %vm728_vm4, %v712_v12, %v745_v15  ;;  %v762_v63 = vsel %vm729_vm5, %v713_v28, %v746_v26  ;;  %v715_v46 = vadd.f32 %v2950_v56, %v693_v19  ;;  %v674_v23 = vmul.f32 %v2927_v54, %v2805_v22  ;;  %v2377_v12 = vld [vmem:[%s3866_s16 + $0x10] sm:$0xff]  }
 0x27d   :  { %v3015_v48 = vadd.f32 %v2995_v57, %v913_v20  ;;  %v986_v38 = vpack.c.bf16 %v762_v63, %v761_v55  ;;  %2290 = vmatpush3.bf16.msra.mxu0 %v2732_v59  ;;  %vm730_vm6 = vcmp.ge.f32.partialorder %v714_v24, 0.0  ;;  %v747_v8 = vmul.f32 %v2937_v14, %v714_v24  ;;  %v2378_v20 = vld [vmem:[%s3866_s16 + $0x18] sm:$0xff]  }
 0x27e   :  { %2291 = vmatprep.subr.bf16.mxu0 %v2376_v17  ;;  %vm731_vm7 = vcmp.ge.f32.partialorder %v715_v46, 0.0  ;;  %v748_v16 = vmul.f32 %v2937_v14, %v715_v46  ;;  %v694_v28 = vmul.f32 %v2932_v49, %v672_v43  ;;  %v695_v22 = vmul.f32 %v2932_v49, %v673_v10 }
 0x27f   :  { %2277 = vmatprep.mubr.bf16.mxu0 %v986_v38  ;;  %v763_v52 = vsel %vm730_vm6, %v714_v24, %v747_v8  ;;  %v675_v59 = vmul.f32 %v2927_v54, %v2807_v29  ;;  %v696_v61 = vmul.f32 %v2932_v49, %v674_v23  ;;  %v676_v13 = vmul.f32 %v2927_v54, %v2809_v30  ;;  %v2379_v8 = vld [vmem:[%s3866_s16 + $0x20] sm:$0xff]  }
 0x280   :  { %v764_v45 = vsel %vm731_vm7, %v715_v46, %v748_v16  ;;  %v716_v58 = vadd.f32 %v2950_v56, %v694_v28  ;;  %v717_v60 = vadd.f32 %v2950_v56, %v695_v22  ;;  %v677_v51 = vmul.f32 %v2927_v54, %v2811_v37 }
 0x281   :  { %2292 = vmatpush3.bf16.msra.mxu0 %v2376_v17  ;;  %v987_v62 = vpack.c.bf16 %v764_v45, %v763_v52  ;;  %v697_v15 = vmul.f32 %v2932_v49, %v675_v59  ;;  %v718_v26 = vadd.f32 %v2950_v56, %v696_v61  ;;  %v698_v29 = vmul.f32 %v2932_v49, %v676_v13 }
 0x282   :  { %2293 = vmatprep.subr.bf16.mxu0 %v2377_v12  ;;  %vm732_vm8 = vcmp.ge.f32.partialorder %v716_v58, 0.0  ;;  %vm733_vm9 = vcmp.ge.f32.partialorder %v717_v60, 0.0  ;;  %v749_v30 = vmul.f32 %v2937_v14, %v716_v58  ;;  %v750_v19 = vmul.f32 %v2937_v14, %v717_v60 }
 0x283   :  { %v719_v37 = vadd.f32 %v2950_v56, %v697_v15  ;;  %vm734_vm10 = vcmp.ge.f32.partialorder %v718_v26, 0.0  ;;  %v751_v17 = vmul.f32 %v2937_v14, %v718_v26  ;;  %v699_v24 = vmul.f32 %v2932_v49, %v677_v51 }
 0x284   :  { %2278 = vmatmul.mubr.bf16.gmra.mrb[20].mxu0 %v987_v62  ;;  %v765_v43 = vsel %vm732_vm8, %v716_v58, %v749_v30  ;;  %v766_v10 = vsel %vm733_vm9, %v717_v60, %v750_v19  ;;  %v720_v55 = vadd.f32 %v2950_v56, %v698_v29  ;;  %v678_v63 = vmul.f32 %v2927_v54, %v2813_v31 }
 0x285   :  { %v988_v46 = vpack.c.bf16 %v766_v10, %v765_v43  ;;  %2294 = vmatpush3.bf16.msra.mxu0 %v2377_v12  ;;  %vm735_vm11 = vcmp.ge.f32.partialorder %v719_v37, 0.0  ;;  %v752_v23 = vmul.f32 %v2937_v14, %v719_v37  ;;  %v767_v38 = vsel %vm734_vm10, %v718_v26, %v751_v17 }
 0x286   :  { %2295 = vmatprep.subr.bf16.mxu0 %v2378_v20  ;;  %v721_v16 = vadd.f32 %v2950_v56, %v699_v24  ;;  %vm736_vm12 = vcmp.ge.f32.partialorder %v720_v55, 0.0  ;;  %v753_v28 = vmul.f32 %v2937_v14, %v720_v55  ;;  %v700_v22 = vmul.f32 %v2932_v49, %v678_v63 }
 0x287   :  { %2281 = vmatprep.mubr.bf16.mxu0 %v988_v46  ;;  %v768_v31 = vsel %vm735_vm11, %v719_v37, %v752_v23  ;;  %vm739_vm13 = vcmp.ge.f32.partialorder %v2970_v34, 0.0  ;;  %v756_v54 = vmul.f32 %v2937_v14, %v2970_v34  ;;  %v876_v12 = vmul.f32 %v2983_v27, %v2826_v50  ;;  %v2380_v50 = vld [vmem:[%s3866_s16 + $0x28] sm:$0xff]   ;;  %v2381_v37 = vld [vmem:[%s3866_s16 + $0x30] sm:$0xff]  }
 0x288   :  { %v989_v52 = vpack.c.bf16 %v768_v31, %v767_v38  ;;  %vm737_vm14 = vcmp.ge.f32.partialorder %v721_v16, 0.0  ;;  %v754_v59 = vmul.f32 %v2937_v14, %v721_v16  ;;  %v769_v61 = vsel %vm736_vm12, %v720_v55, %v753_v28  ;;  %v2382_v28 = vld [vmem:[%s3866_s16 + $0x38] sm:$0xff]  }
 0x289   :  { %2296 = vmatpush3.bf16.msra.mxu0 %v2378_v20  ;;  %v722_v13 = vadd.f32 %v2950_v56, %v700_v22  ;;  %v772_v49 = vsel %vm739_vm13, %v2970_v34, %v756_v54  ;;  %v877_v45 = vmul.f32 %v2983_v27, %v2829_v9  ;;  %v898_v58 = vmul.f32 %v2988_v53, %v876_v12 }
 0x28a   :  { %2297 = vmatprep.subr.bf16.mxu0 %v2379_v8  ;;  %v770_v60 = vsel %vm737_vm14, %v721_v16, %v754_v59  ;;  %v878_v51 = vmul.f32 %v2983_v27, %v2832_v21  ;;  %v879_v62 = vmul.f32 %v2983_v27, %v2835_v35  ;;  %v880_v56 = vmul.f32 %v2983_v27, %v2838_v36 }
 0x28b   :  { %v990_v34 = vpack.c.bf16 %v770_v60, %v769_v61  ;;  %vm738_vm15 = vcmp.ge.f32.partialorder %v722_v13, 0.0  ;;  %v755_v9 = vmul.f32 %v2937_v14, %v722_v13  ;;  %v899_v15 = vmul.f32 %v2988_v53, %v877_v45 }
 0x28c   :  { %2282 = vmatmul.mubr.bf16.gmra.mrb[24].mxu0 %v989_v52  ;;  %v920_v26 = vadd.f32 %v2995_v57, %v898_v58  ;;  %v900_v29 = vmul.f32 %v2988_v53, %v878_v51  ;;  %v901_v30 = vmul.f32 %v2988_v53, %v879_v62  ;;  %v881_v21 = vmul.f32 %v2983_v27, %v2841_v39 }
 0x28d   :  { %2285 = vmatprep.mubr.bf16.mxu0 %v990_v34  ;;  %2298 = vmatpush3.bf16.msra.mxu0 %v2379_v8  ;;  %v771_v35 = vsel %vm738_vm15, %v722_v13, %v755_v9  ;;  %v921_v36 = vadd.f32 %v2995_v57, %v899_v15  ;;  %v902_v19 = vmul.f32 %v2988_v53, %v880_v56  ;;  %vm951_vm14 = vcmp.ge.f32.partialorder %v3015_v48, 0.0 }
 0x28e   :  { %2299 = vmatprep.subr.bf16.mxu0 %v2380_v50  ;;  %v991_v20 = vpack.c.bf16 %v772_v49, %v771_v35  ;;  %vm936_vm0 = vcmp.ge.f32.partialorder %v920_v26, 0.0  ;;  %v952_v17 = vmul.f32 %v920_v26, %v2937_v14  ;;  %v922_v24 = vadd.f32 %v2995_v57, %v900_v29 }
 0x28f   :  { %vm937_vm1 = vcmp.ge.f32.partialorder %v921_v36, 0.0  ;;  %v953_v39 = vmul.f32 %v921_v36, %v2937_v14  ;;  %v923_v43 = vadd.f32 %v2995_v57, %v901_v30  ;;  %v903_v10 = vmul.f32 %v2988_v53, %v881_v21 }
 0x290   :  { %v968_v55 = vsel %vm936_vm0, %v920_v26, %v952_v17  ;;  %vm938_vm2 = vcmp.ge.f32.partialorder %v922_v24, 0.0  ;;  %v954_v63 = vmul.f32 %v922_v24, %v2937_v14  ;;  %v924_v46 = vadd.f32 %v2995_v57, %v902_v19 }
 0x291   :  { %2300 = vmatpush3.bf16.msra.mxu0 %v2380_v50  ;;  %v969_v23 = vsel %vm937_vm1, %v921_v36, %v953_v39  ;;  %vm939_vm3 = vcmp.ge.f32.partialorder %v923_v43, 0.0  ;;  %v955_v38 = vmul.f32 %v923_v43, %v2937_v14  ;;  %v925_v8 = vadd.f32 %v2995_v57, %v903_v10 }
 0x292   :  { %2301 = vmatprep.subr.bf16.mxu0 %v2381_v37  ;;  %v1161_v16 = vpack.c.bf16 %v969_v23, %v968_v55  ;;  %v970_v22 = vsel %vm938_vm2, %v922_v24, %v954_v63  ;;  %vm940_vm4 = vcmp.ge.f32.partialorder %v924_v46, 0.0  ;;  %v956_v31 = vmul.f32 %v924_v46, %v2937_v14 }
 0x293   :  { %v971_v54 = vsel %vm939_vm3, %v923_v43, %v955_v38  ;;  %vm941_vm5 = vcmp.ge.f32.partialorder %v925_v8, 0.0  ;;  %v957_v12 = vmul.f32 %v925_v8, %v2937_v14  ;;  %v882_v52 = vmul.f32 %v2983_v27, %v2844_v41 }
 0x294   :  { %2286 = vmatmul.mubr.bf16.gmra.mrb[28].mxu0 %v991_v20  ;;  %v1162_v59 = vpack.c.bf16 %v971_v54, %v970_v22  ;;  %v972_v61 = vsel %vm940_vm4, %v924_v46, %v956_v31  ;;  %v883_v13 = vmul.f32 %v2983_v27, %v2847_v42  ;;  %v884_v49 = vmul.f32 %v2983_v27, %v2850_v11 }
 0x295   :  { %2302 = vmatpush3.bf16.msra.mxu0 %v2381_v37  ;;  %2305 = vmatprep.mubr.bf16.mxu0 %v1161_v16  ;;  %v973_v45 = vsel %vm941_vm5, %v925_v8, %v957_v12  ;;  %v904_v58 = vmul.f32 %v2988_v53, %v882_v52  ;;  %v885_v60 = vmul.f32 %v2983_v27, %v2853_v18 }
 0x296   :  { %2303 = vmatprep.subr.bf16.mxu0 %v2382_v28  ;;  %v1163_v50 = vpack.c.bf16 %v973_v45, %v972_v61  ;;  %v905_v41 = vmul.f32 %v2988_v53, %v883_v13  ;;  %v906_v51 = vmul.f32 %v2988_v53, %v884_v49  ;;  %v886_v42 = vmul.f32 %v2983_v27, %v2856_v25  ;;  %v135_v45 = vld [vmem:[%s3884_s5 + $0x8] sm:$0xff] }
 0x297   :  { %v926_v62 = vadd.f32 %v2995_v57, %v904_v58  ;;  %v907_v11 = vmul.f32 %v2988_v53, %v885_v60  ;;  %v887_v56 = vmul.f32 %v2983_v27, %v2859_v33  ;;  %v888_v34 = vmul.f32 %v2983_v27, %v2862_v40  ;;  %v139_v58 = vld [vmem:[%s3884_s5 + $0x28] sm:$0xff]  ;;  %v138_v60 = vld [vmem:[%s3884_s5 + $0x20] sm:$0xff] }
 0x298   :  { %v927_v18 = vadd.f32 %v2995_v57, %v905_v41  ;;  %v928_v9 = vadd.f32 %v2995_v57, %v906_v51  ;;  %v908_v15 = vmul.f32 %v2988_v53, %v886_v42  ;;  %v889_v26 = vmul.f32 %v2983_v27, %v2865_v47  ;;  %v140_v41 = vld [vmem:[%s3884_s5 + $0x30] sm:$0xff]  ;;  %v143_v51 = vld [vmem:[%s3884_s5 + $0x48] sm:$0xff]  ;;  %v142_v42 = vld [vmem:[%s3884_s5 + $0x40] sm:$0xff] }
 0x299   :  { %2304 = vmatpush3.bf16.msra.mxu0 %v2382_v28  ;;  %vm942_vm6 = vcmp.ge.f32.partialorder %v926_v62, 0.0  ;;  %v958_v25 = vmul.f32 %v926_v62, %v2937_v14  ;;  %v929_v29 = vadd.f32 %v2995_v57, %v907_v11  ;;  %v909_v33 = vmul.f32 %v2988_v53, %v887_v56  ;;  %v145_v11 = vld [vmem:[%s3884_s5 + $0x58] sm:$0xff]  ;;  %v144_v56 = vld [vmem:[%s3884_s5 + $0x50] sm:$0xff] }
 0x29a   :  { %vm943_vm7 = vcmp.ge.f32.partialorder %v927_v18, 0.0  ;;  %v959_v40 = vmul.f32 %v927_v18, %v2937_v14  ;;  %vm944_vm8 = vcmp.ge.f32.partialorder %v928_v9, 0.0  ;;  %v960_v30 = vmul.f32 %v928_v9, %v2937_v14 }
 0x29b   :  { %v974_v21 = vsel %vm942_vm6, %v926_v62, %v958_v25  ;;  %vm945_vm9 = vcmp.ge.f32.partialorder %v929_v29, 0.0  ;;  %v961_v35 = vmul.f32 %v929_v29, %v2937_v14  ;;  %v930_v47 = vadd.f32 %v2995_v57, %v908_v15  ;;  %v147_v25 = vld [vmem:[%s3884_s5 + $0x68] sm:$0xff] }
 0x29c   :  { %2306 = vmatmul.mubr.bf16.vlgmr.msra.gmra.mrb[32].mxu0 %v1162_v59  ;;  %v975_v36 = vsel %vm943_vm7, %v927_v18, %v959_v40  ;;  %v976_v19 = vsel %vm944_vm8, %v928_v9, %v960_v30  ;;  %v931_v20 = vadd.f32 %v2995_v57, %v909_v33  ;;  %v910_v37 = vmul.f32 %v2988_v53, %v888_v34  ;;  %v149_v40 = vld [vmem:[%s3884_s5 + $0x78] sm:$0xff]  ;;  %v148_v30 = vld [vmem:[%s3884_s5 + $0x70] sm:$0xff] }
 0x29d   :  { %2309 = vmatprep.mubr.bf16.mxu0 %v1163_v50  ;;  %v1164_v17 = vpack.c.bf16 %v975_v36, %v974_v21  ;;  %v977_v24 = vsel %vm945_vm9, %v929_v29, %v961_v35  ;;  %vm946_vm10 = vcmp.ge.f32.partialorder %v930_v47, 0.0  ;;  %v962_v39 = vmul.f32 %v930_v47, %v2937_v14  ;;  %v141_v50 = vld [vmem:[%s3884_s5 + $0x38] sm:$0xff]  ;;  %v146_v29 = vld [vmem:[%s3884_s5 + $0x60] sm:$0xff] }
 0x29e   :  { %v1165_v43 = vpack.c.bf16 %v977_v24, %v976_v19  ;;  %vm947_vm11 = vcmp.ge.f32.partialorder %v931_v20, 0.0  ;;  %v963_v10 = vmul.f32 %v931_v20, %v2937_v14  ;;  %v911_v55 = vmul.f32 %v2988_v53, %v889_v26 }
 0x29f   :  { %v978_v63 = vsel %vm946_vm10, %v930_v47, %v962_v39  ;;  %v932_v46 = vadd.f32 %v2995_v57, %v910_v37  ;;  %v890_v23 = vmul.f32 %v2983_v27, %v2869_v44  ;;  %v967_v16 = vmul.f32 %v3015_v48, %v2937_v14 }
 0x2a0   :  { %v979_v38 = vsel %vm947_vm11, %v931_v20, %v963_v10  ;;  %v933_v8 = vadd.f32 %v2995_v57, %v911_v55  ;;  %v2394_v20 = vmov 1  }
 0x2a1   :  { %v1166_v28 = vpack.c.bf16 %v979_v38, %v978_v63  ;;  %vm948_vm12 = vcmp.ge.f32.partialorder %v932_v46, 0.0  ;;  %v964_v22 = vmul.f32 %v932_v46, %v2937_v14  ;;  %v912_v31 = vmul.f32 %v2988_v53, %v890_v23  ;;  %v136_v53 = vld [vmem:[%s3884_s5 + $0x10] sm:$0xff] }
 0x2a2   :  { %vm949_vm13 = vcmp.ge.f32.partialorder %v933_v8, 0.0  ;;  %v965_v54 = vmul.f32 %v933_v8, %v2937_v14  ;;  %v983_v61 = vsel %vm951_vm14, %v3015_v48, %v967_v16  ;;  %1885 = vperm.xlu1 %2340, %v136_v53   ;;  %v137_v48 = vld [vmem:[%s3884_s5 + $0x18] sm:$0xff] }
 0x2a3   :  { %v980_v12 = vsel %vm948_vm12, %v932_v46, %v964_v22  ;;  %v934_v44 = vadd.f32 %v2995_v57, %v912_v31  ;;  %v134_v57 = vld [vmem:[%s3884_s5] sm:$0xff] }
 0x2a4   :  { %2310 = vmatmul.mubr.bf16.gmra.mrb[36].mxu0 %v1164_v17  ;;  %v981_v27 = vsel %vm949_vm13, %v933_v8, %v965_v54  ;;  %1875 = vperm.xlu0 %2339, %v134_v57  }
 0x2a5   :  { %2313 = vmatprep.mubr.bf16.mxu0 %v1165_v43  ;;  %v1167_v52 = vpack.c.bf16 %v981_v27, %v980_v12  ;;  %vm950_vm15 = vcmp.ge.f32.partialorder %v934_v44, 0.0  ;;  %v966_v59 = vmul.f32 %v934_v44, %v2937_v14 }
 0x2a6   :  { %1890 = vperm.xlu1 %2340, %v137_v48  }
 0x2a7   :  { %v982_v13 = vsel %vm950_vm15, %v934_v44, %v966_v59 }
 0x2a8   :  { %v1168_v49 = vpack.c.bf16 %v983_v61, %v982_v13  ;;  %1880 = vperm.xlu0 %2339, %v135_v45  }
 0x2aa   :  { %1900 = vperm.xlu1 %2340, %v139_v58  }
 0x2ac   :  { %2314 = vmatmul.mubr.bf16.gmra.mrb[40].mxu0 %v1166_v28  ;;  %1895 = vperm.xlu0 %2339, %v138_v60  }
 0x2ad   :  { %2317 = vmatprep.mubr.bf16.mxu0 %v1167_v52 }
 0x2ae   :  { %1910 = vperm.xlu1 %2340, %v141_v50  }
 0x2b0   :  { %1905 = vperm.xlu0 %2339, %v140_v41  }
 0x2b2   :  { %1920 = vperm.xlu1 %2340, %v143_v51  }
 0x2b4   :  { %2318 = vmatmul.mubr.bf16.gmra.mrb[44].mxu0 %v1168_v49  ;;  %1915 = vperm.xlu0 %2339, %v142_v42  }
 0x2b5   :  { %1370 = vmatprep.mubr.bf16.mxu0 %v2393_v32 }
 0x2b6   :  { %1930 = vperm.xlu1 %2340, %v145_v11  }
 0x2b8   :  { %1925 = vperm.xlu0 %2339, %v144_v56  }
 0x2ba   :  { %1940 = vperm.xlu1 %2340, %v147_v25  }
 0x2bc   :  { %1935 = vperm.xlu0 %2339, %v146_v29  }
 0x2be   :  { %1950 = vperm.xlu1 %2340, %v149_v40  }
 0x2c0   :  { %1945 = vperm.xlu0 %2339, %v148_v30  }
 0x2c2   :  { %2342 = vset.pattern.permute.xlu1 %v2394_v20 }
 0x2c3   :  { %2006 = vperm.xlu1 %2342, %v135_v45  }
 0x2c4   :  { %2341 = vset.pattern.permute.xlu0 %v2394_v20 }
 0x2c5   :  { %2002 = vperm.xlu0 %2341, %v134_v57  }
 0x2c7   :  { %2010 = vperm.xlu1 %2342, %v136_v53  }
 0x2c9   :  { %2014 = vperm.xlu0 %2341, %v137_v48  }
 0x2cb   :  { %2018 = vperm.xlu1 %2342, %v138_v60  }
 0x2cd   :  { %2022 = vperm.xlu0 %2341, %v139_v58  }
 0x2cf   :  { %2026 = vperm.xlu1 %2342, %v140_v41  }
 0x2d1   :  { %2030 = vperm.xlu0 %2341, %v141_v50  }
 0x2d3   :  { %2034 = vperm.xlu1 %2342, %v142_v42  }
 0x2d5   :  { %2038 = vperm.xlu0 %2341, %v143_v51  }
 0x2d7   :  { %2042 = vperm.xlu1 %2342, %v144_v56  }
 0x2d9   :  { %2046 = vperm.xlu0 %2341, %v145_v11  }
 0x2db   :  { %2050 = vperm.xlu1 %2342, %v146_v29  }
 0x2dd   :  { %2054 = vperm.xlu0 %2341, %v147_v25  }
 0x2df   :  { %2058 = vperm.xlu1 %2342, %v148_v30  }
 0x2e1   :  { %2062 = vperm.xlu0 %2341, %v149_v40  }
 0x34f   :  { %v2275_v62 = vpop.f32.mrb[16].mxu0 }
 0x350   :  { %v1090_v34 = vpop.f32.mrb[17].mxu0 }
 0x351   :  { %v2276_v18 = vpop.f32.mrb[18].mxu0 }
 0x352   :  { %v3187_v9 = vpack.c.bf16 %v2276_v18, %v2275_v62  ;;  %v1093_v15 = vpop.f32.mrb[19].mxu0 }
 0x353   :  { %v1153_v26 = vpack.c.bf16 %v1093_v15, %v1090_v34 }
 0x357   :  { %v2279_v33 = vpop.f32.mrb[20].mxu0 }
 0x358   :  { %v1106_v21 = vpop.f32.mrb[21].mxu0 }
 0x359   :  { %v2280_v35 = vpop.f32.mrb[22].mxu0 }
 0x35a   :  { %v3201_v47 = vpack.c.bf16 %v2280_v35, %v2279_v33  ;;  %v1109_v36 = vpop.f32.mrb[23].mxu0 }
 0x35b   :  { %v1155_v19 = vpack.c.bf16 %v1109_v36, %v1106_v21 }
 0x35f   :  { %v2283_v37 = vpop.f32.mrb[24].mxu0 }
 0x360   :  { %v1122_v17 = vpop.f32.mrb[25].mxu0 }
 0x361   :  { %v2284_v24 = vpop.f32.mrb[26].mxu0 }
 0x362   :  { %v3203_v39 = vpack.c.bf16 %v2284_v24, %v2283_v37  ;;  %v1125_v43 = vpop.f32.mrb[27].mxu0 }
 0x363   :  { %v1157_v10 = vpack.c.bf16 %v1125_v43, %v1122_v17 }
 0x367   :  { %v2287_v55 = vpop.f32.mrb[28].mxu0 }
 0x368   :  { %v1138_v63 = vpop.f32.mrb[29].mxu0 }
 0x369   :  { %v2288_v46 = vpop.f32.mrb[30].mxu0 }
 0x36a   :  { %v3205_v23 = vpack.c.bf16 %v2288_v46, %v2287_v55  ;;  %v1141_v38 = vpop.f32.mrb[31].mxu0 }
 0x36b   :  { %v1159_v8 = vpack.c.bf16 %v1141_v38, %v1138_v63 }
 0x36f   :  { %v2307_v16 = vpop.f32.mrb[32].mxu0 }
 0x370   :  { %v1267_v28 = vpop.f32.mrb[33].mxu0 }
 0x371   :  { %v2308_v22 = vpop.f32.mrb[34].mxu0 }
 0x372   :  { %v1331_v31 = vpack.c.bf16 %v2308_v22, %v2307_v16  ;;  %v1270_v54 = vpop.f32.mrb[35].mxu0 }
 0x373   :  { %v1330_v12 = vpack.c.bf16 %v1270_v54, %v1267_v28 }
 0x375   :  { %1338 = vmatprep.subr.bf16.mxu0 %v1330_v12  ;;  %2321 = vmatprep.subr.bf16.mxu1 %v1330_v12 }
 0x376   :  { %1339 = vmatpush1.bf16.msra.mxu0 %v1153_v26  ;;  %2329 = vmatpush1.bf16.msra.mxu1 %v1153_v26 }
 0x377   :  { %v2311_v44 = vpop.f32.mrb[36].mxu0  ;;  %1340 = vmatprep.subr.bf16.mxu0 %v1331_v31  ;;  %2322 = vmatprep.subr.bf16.mxu1 %v1331_v31 }
 0x378   :  { %v1283_v27 = vpop.f32.mrb[37].mxu0 }
 0x379   :  { %v2312_v52 = vpop.f32.mrb[38].mxu0 }
 0x37a   :  { %v1333_v59 = vpack.c.bf16 %v2312_v52, %v2311_v44  ;;  %v1286_v61 = vpop.f32.mrb[39].mxu0  ;;  %1341 = vmatpush1.bf16.msra.mxu0 %v3187_v9  ;;  %2330 = vmatpush1.bf16.msra.mxu1 %v3187_v9 }
 0x37b   :  { %v1332_v13 = vpack.c.bf16 %v1286_v61, %v1283_v27 }
 0x37d   :  { %1342 = vmatprep.subr.bf16.mxu0 %v1332_v13  ;;  %2323 = vmatprep.subr.bf16.mxu1 %v1332_v13 }
 0x37e   :  { %1343 = vmatpush1.bf16.msra.mxu0 %v1155_v19  ;;  %2331 = vmatpush1.bf16.msra.mxu1 %v1155_v19 }
 0x37f   :  { %v2315_v49 = vpop.f32.mrb[40].mxu0  ;;  %1344 = vmatprep.subr.bf16.mxu0 %v1333_v59  ;;  %2324 = vmatprep.subr.bf16.mxu1 %v1333_v59 }
 0x380   :  { %v1299_v53 = vpop.f32.mrb[41].mxu0 }
 0x381   :  { %v2316_v57 = vpop.f32.mrb[42].mxu0 }
 0x382   :  { %v1335_v48 = vpack.c.bf16 %v2316_v57, %v2315_v49  ;;  %v1302_v45 = vpop.f32.mrb[43].mxu0  ;;  %1345 = vmatpush1.bf16.msra.mxu0 %v3201_v47  ;;  %2332 = vmatpush1.bf16.msra.mxu1 %v3201_v47 }
 0x383   :  { %v1334_v58 = vpack.c.bf16 %v1302_v45, %v1299_v53 }
 0x385   :  { %1346 = vmatprep.subr.bf16.mxu0 %v1334_v58  ;;  %2325 = vmatprep.subr.bf16.mxu1 %v1334_v58 }
 0x386   :  { %1347 = vmatpush1.bf16.msra.mxu0 %v1157_v10  ;;  %2333 = vmatpush1.bf16.msra.mxu1 %v1157_v10 }
 0x387   :  { %v2319_v60 = vpop.f32.mrb[44].mxu0  ;;  %1348 = vmatprep.subr.bf16.mxu0 %v1335_v48  ;;  %2326 = vmatprep.subr.bf16.mxu1 %v1335_v48 }
 0x388   :  { %v1315_v50 = vpop.f32.mrb[45].mxu0 }
 0x389   :  { %v2320_v41 = vpop.f32.mrb[46].mxu0 }
 0x38a   :  { %v1337_v51 = vpack.c.bf16 %v2320_v41, %v2319_v60  ;;  %v1318_v42 = vpop.f32.mrb[47].mxu0  ;;  %1349 = vmatpush1.bf16.msra.mxu0 %v3203_v39  ;;  %2334 = vmatpush1.bf16.msra.mxu1 %v3203_v39 }
 0x38b   :  { %v1336_v62 = vpack.c.bf16 %v1318_v42, %v1315_v50 }
 0x38d   :  { %1350 = vmatprep.subr.bf16.mxu0 %v1336_v62  ;;  %2327 = vmatprep.subr.bf16.mxu1 %v1336_v62 }
 0x38e   :  { %1351 = vmatpush1.bf16.msra.mxu0 %v1159_v8  ;;  %2335 = vmatpush1.bf16.msra.mxu1 %v1159_v8 }
 0x38f   :  { %1352 = vmatprep.subr.bf16.mxu0 %v1337_v51  ;;  %2328 = vmatprep.subr.bf16.mxu1 %v1337_v51 }
 0x392   :  { %1353 = vmatpush1.bf16.msra.mxu0 %v3205_v23  ;;  %2336 = vmatpush1.bf16.msra.mxu1 %v3205_v23 }
 0x395   :  { %1391 = vmatmul.mubr.bf16.vlgmr.msra.gmra.mrb[32].mxu1 %v2513_v2  ;;  %1371 = vmatmul.mubr.bf16.vlgmr.msra.gmra.mrb[48].mxu0 %v2503_v0 }
 0x396   :  { %1400 = vmatprep.mubr.bf16.mxu1 %v2393_v32  ;;  %1380 = vmatprep.mubr.bf16.mxu0 %v2393_v32 }
 0x39d   :  { %1401 = vmatmul.mubr.bf16.gmra.mrb[36].mxu1 %v2518_v3  ;;  %1381 = vmatmul.mubr.bf16.gmra.mrb[52].mxu0 %v2508_v1  ;;  %v3232_v1 = vld [vmem:[%s3859_s9] ss:$0 sm:$0xff] }
 0x39e   :  { %1410 = vmatprep.mubr.bf16.mxu1 %v2393_v32 }
 0x3a5   :  { %1411 = vmatmul.mubr.bf16.gmra.mrb[40].mxu1 %v2523_v4 }
 0x3a6   :  { %1420 = vmatprep.mubr.bf16.mxu1 %v2393_v32 }
 0x3ad   :  { %1421 = vmatmul.mubr.bf16.gmra.mrb[44].mxu1 %v2528_v5  ;;  %v3240_v5 = vld [vmem:[%s3867_s17] ss:$0 sm:$0xff] }
 0x3ae   :  { %1430 = vmatprep.mubr.bf16.mxu1 %v2393_v32 }
 0x3b5   :  { %1431 = vmatmul.mubr.bf16.gmra.mrb[48].mxu1 %v2533_v6 }
 0x3b6   :  { %1440 = vmatprep.mubr.bf16.mxu1 %v2393_v32 }
 0x3bd   :  { %1441 = vmatmul.mubr.bf16.gmra.mrb[52].mxu1 %v2538_v7 }
 0x468   :  { %v1372_v0 = vpop.f32.mrb[48].mxu0  ;;  %v1392_v2 = vpop.f32.mrb[32].mxu1 }
 0x469   :  { %v3235_v3 = vadd.f32 %v3232_v1, %v1372_v0  ;;  %v1374_v4 = vpop.f32.mrb[49].mxu0  ;;  %v1394_v6 = vpop.f32.mrb[33].mxu1  ;;  %v3271_v43 = vadd.f32 %v3232_v1, %v1392_v2 }
 0x46a   :  { %v3243_v32 = vadd.f32 %v3240_v5, %v1374_v4  ;;  %v1376_v7 = vpop.f32.mrb[50].mxu0  ;;  %v1396_v11 = vpop.f32.mrb[34].mxu1  ;;  %v3275_v55 = vadd.f32 %v3240_v5, %v1394_v6 }
 0x46b   :  { %v3246_v56 = vadd.f32 %v3232_v1, %v1376_v7  ;;  %v1378_v34 = vpop.f32.mrb[51].mxu0  ;;  %v1398_v18 = vpop.f32.mrb[35].mxu1  ;;  %v3279_v46 = vadd.f32 %v3232_v1, %v1396_v11 }
 0x46c   :  { %v3249_v9 = vadd.f32 %v3240_v5, %v1378_v34  ;;  %v3283_v38 = vadd.f32 %v3240_v5, %v1398_v18 }
 0x46d   :  { %v1476_v15 = vadd.f32 %v3246_v56, %v3235_v3 }
 0x46e   :  { %v1687_v26 = vadd.f32 %v3249_v9, %v3243_v32 }
 0x470   :  { %v1382_v25 = vpop.f32.mrb[52].mxu0  ;;  %v1402_v29 = vpop.f32.mrb[36].mxu1 }
 0x471   :  { %v3256_v33 = vadd.f32 %v3232_v1, %v1382_v25  ;;  %v1384_v40 = vpop.f32.mrb[53].mxu0  ;;  %v1404_v30 = vpop.f32.mrb[37].mxu1  ;;  %v3287_v28 = vadd.f32 %v3232_v1, %v1402_v29 }
 0x472   :  { %v3259_v21 = vadd.f32 %v3240_v5, %v1384_v40  ;;  %v1386_v35 = vpop.f32.mrb[54].mxu0  ;;  %v1406_v47 = vpop.f32.mrb[38].mxu1  ;;  %v3291_v54 = vadd.f32 %v3240_v5, %v1404_v30 }
 0x473   :  { %v1477_v36 = vadd.f32 %v1476_v15, %v3256_v33  ;;  %v3263_v19 = vadd.f32 %v3232_v1, %v1386_v35  ;;  %v1388_v20 = vpop.f32.mrb[55].mxu0  ;;  %v1408_v37 = vpop.f32.mrb[39].mxu1  ;;  %v3295_v27 = vadd.f32 %v3232_v1, %v1406_v47 }
 0x474   :  { %v1688_v17 = vadd.f32 %v1687_v26, %v3259_v21  ;;  %v3267_v24 = vadd.f32 %v3240_v5, %v1388_v20  ;;  %v3299_v61 = vadd.f32 %v3240_v5, %v1408_v37 }
 0x475   :  { %v1478_v39 = vadd.f32 %v1477_v36, %v3263_v19 }
 0x476   :  { %v1689_v10 = vadd.f32 %v1688_v17, %v3267_v24 }
 0x477   :  { %v1479_v63 = vadd.f32 %v1478_v39, %v3271_v43 }
 0x478   :  { %v1690_v23 = vadd.f32 %v1689_v10, %v3275_v55  ;;  %v1412_v8 = vpop.f32.mrb[40].mxu1 }
 0x479   :  { %v1480_v16 = vadd.f32 %v1479_v63, %v3279_v46  ;;  %v1414_v22 = vpop.f32.mrb[41].mxu1  ;;  %v3303_v49 = vadd.f32 %v3232_v1, %v1412_v8 }
 0x47a   :  { %v1691_v31 = vadd.f32 %v1690_v23, %v3283_v38  ;;  %v1416_v12 = vpop.f32.mrb[42].mxu1  ;;  %v3307_v57 = vadd.f32 %v3240_v5, %v1414_v22 }
 0x47b   :  { %v1481_v44 = vadd.f32 %v1480_v16, %v3287_v28  ;;  %v1418_v52 = vpop.f32.mrb[43].mxu1  ;;  %v3311_v45 = vadd.f32 %v3232_v1, %v1416_v12 }
 0x47c   :  { %v1692_v59 = vadd.f32 %v1691_v31, %v3291_v54  ;;  %v3315_v60 = vadd.f32 %v3240_v5, %v1418_v52 }
 0x47d   :  { %v1482_v13 = vadd.f32 %v1481_v44, %v3295_v27 }
 0x47e   :  { %v1693_v53 = vadd.f32 %v1692_v59, %v3299_v61 }
 0x47f   :  { %v1483_v48 = vadd.f32 %v1482_v13, %v3303_v49 }
 0x480   :  { %v1694_v58 = vadd.f32 %v1693_v53, %v3307_v57  ;;  %v1422_v50 = vpop.f32.mrb[44].mxu1 }
 0x481   :  { %v1484_v41 = vadd.f32 %v1483_v48, %v3311_v45  ;;  %v1468_v51 = vadd.f32 %v3232_v1, %v1422_v50  ;;  %v1424_v42 = vpop.f32.mrb[45].mxu1 }
 0x482   :  { %v1695_v62 = vadd.f32 %v1694_v58, %v3315_v60  ;;  %v3321_v0 = vadd.f32 %v3240_v5, %v1424_v42  ;;  %v1426_v2 = vpop.f32.mrb[46].mxu1 }
 0x483   :  { %v1485_v4 = vadd.f32 %v1484_v41, %v1468_v51  ;;  %v1469_v6 = vadd.f32 %v3232_v1, %v1426_v2  ;;  %v1428_v7 = vpop.f32.mrb[47].mxu1 }
 0x484   :  { %v1696_v11 = vadd.f32 %v1695_v62, %v3321_v0  ;;  %v3326_v34 = vadd.f32 %v3240_v5, %v1428_v7 }
 0x485   :  { %v1486_v18 = vadd.f32 %v1485_v4, %v1469_v6 }
 0x486   :  { %v1697_v15 = vadd.f32 %v1696_v11, %v3326_v34 }
 0x488   :  { %v1432_v26 = vpop.f32.mrb[48].mxu1 }
 0x489   :  { %v1470_v25 = vadd.f32 %v3232_v1, %v1432_v26  ;;  %v1434_v29 = vpop.f32.mrb[49].mxu1 }
 0x48a   :  { %v3331_v40 = vadd.f32 %v3240_v5, %v1434_v29  ;;  %v1436_v30 = vpop.f32.mrb[50].mxu1 }
 0x48b   :  { %v1487_v35 = vadd.f32 %v1486_v18, %v1470_v25  ;;  %v1471_v47 = vadd.f32 %v3232_v1, %v1436_v30  ;;  %v1438_v36 = vpop.f32.mrb[51].mxu1 }
 0x48c   :  { %v1698_v20 = vadd.f32 %v1697_v15, %v3331_v40  ;;  %v3336_v37 = vadd.f32 %v3240_v5, %v1438_v36 }
 0x48d   :  { %v1488_v17 = vadd.f32 %v1487_v35, %v1471_v47 }
 0x48e   :  { %v1699_v39 = vadd.f32 %v1698_v20, %v3336_v37 }
 0x490   :  { %v1442_v10 = vpop.f32.mrb[52].mxu1 }
 0x491   :  { %v1472_v63 = vadd.f32 %v3232_v1, %v1442_v10  ;;  %v1444_v23 = vpop.f32.mrb[53].mxu1 }
 0x492   :  { %v1683_v8 = vadd.f32 %v3240_v5, %v1444_v23  ;;  %v1446_v16 = vpop.f32.mrb[54].mxu1 }
 0x493   :  { %v1489_v22 = vadd.f32 %v1488_v17, %v1472_v63  ;;  %v1473_v31 = vadd.f32 %v3232_v1, %v1446_v16  ;;  %v1448_v12 = vpop.f32.mrb[55].mxu1 }
 0x494   :  { %v1700_v44 = vadd.f32 %v1699_v39, %v1683_v8  ;;  %v1684_v52 = vadd.f32 %v3240_v5, %v1448_v12 }
 0x495   :  { %v1490_v59 = vadd.f32 %v1489_v22, %v1473_v31 }
 0x496   :  { %v1701_v13 = vadd.f32 %v1700_v44, %v1684_v52 }
 0x497   :  { %v1491_v53 = vrot.slane %v1490_v59, 4 }
 0x498   :  { %v1702_v48 = vrot.slane %v1701_v13, 4 }
 0x499   :  { %v1492_v58 = vadd.f32 %v1491_v53, %v1490_v59 }
 0x49a   :  { %v1703_v50 = vadd.f32 %v1702_v48, %v1701_v13 }
 0x49b   :  { %v1493_v41 = vrot.slane %v1492_v58, 2 }
 0x49c   :  { %v1704_v42 = vrot.slane %v1703_v50, 2 }
 0x49d   :  { %v1494_v62 = vadd.f32 %v1493_v41, %v1492_v58 }
 0x49e   :  { %v1705_v2 = vadd.f32 %v1704_v42, %v1703_v50 }
 0x49f   :  { %v1495_v4 = vrot.slane %v1494_v62, 1 }
 0x4a0   :  { %v1706_v7 = vrot.slane %v1705_v2, 1 }
 0x4a1   :  { %v1496_v11 = vadd.f32 %v1495_v4, %v1494_v62 }
 0x4a2   :  { %v1707_v15 = vadd.f32 %v1706_v7, %v1705_v2 }
 0x4a3   :  { %v1497_v18 = vmul.f32 0.0078125, %v1496_v11 }
 0x4a5   :  { %v3344_v1 = vsub.f32 %v3235_v3, %v1497_v18  ;;  %v3347_v5 = vsub.f32 %v3246_v56, %v1497_v18  ;;  %v3350_v26 = vsub.f32 %v3256_v33, %v1497_v18  ;;  %v3353_v29 = vsub.f32 %v3263_v19, %v1497_v18 }
 0x4a6   :  { %v3356_v30 = vsub.f32 %v3271_v43, %v1497_v18  ;;  %v3359_v35 = vsub.f32 %v3279_v46, %v1497_v18  ;;  %v3362_v36 = vsub.f32 %v3287_v28, %v1497_v18  ;;  %v3365_v3 = vsub.f32 %v3295_v27, %v1497_v18 }
 0x4a7   :  { %v3368_v56 = vsub.f32 %v3303_v49, %v1497_v18  ;;  %v3371_v33 = vsub.f32 %v3311_v45, %v1497_v18  ;;  %v3373_v19 = vsub.f32 %v1468_v51, %v1497_v18  ;;  %v3375_v20 = vsub.f32 %v1469_v6, %v1497_v18 }
 0x4a8   :  { %v3377_v43 = vsub.f32 %v1470_v25, %v1497_v18  ;;  %v3379_v46 = vsub.f32 %v1471_v47, %v1497_v18  ;;  %v3381_v17 = vsub.f32 %v1472_v63, %v1497_v18  ;;  %v3383_v28 = vsub.f32 %v1473_v31, %v1497_v18 }
 0x4a9   :  { %v1514_v27 = vmul.f32 %v3344_v1, %v3344_v1  ;;  %v1515_v49 = vmul.f32 %v3347_v5, %v3347_v5  ;;  %v1708_v45 = vmul.f32 0.0078125, %v1707_v15  ;;  %v1516_v51 = vmul.f32 %v3350_v26, %v3350_v26 }
 0x4aa   :  { %v1517_v6 = vmul.f32 %v3353_v29, %v3353_v29  ;;  %v1522_v50 = vmul.f32 %v3368_v56, %v3368_v56  ;;  %v1523_v2 = vmul.f32 %v3371_v33, %v3371_v33  ;;  %v1524_v18 = vmul.f32 %v3373_v19, %v3373_v19 }
 0x4ab   :  { %v1530_v25 = vadd.f32 %v1515_v49, %v1514_v27  ;;  %v3394_v47 = vsub.f32 %v3243_v32, %v1708_v45  ;;  %v3397_v39 = vsub.f32 %v3249_v9, %v1708_v45  ;;  %v3400_v10 = vsub.f32 %v3259_v21, %v1708_v45 }
 0x4ac   :  { %v3403_v63 = vsub.f32 %v3267_v24, %v1708_v45  ;;  %v3406_v23 = vsub.f32 %v3275_v55, %v1708_v45  ;;  %v3409_v16 = vsub.f32 %v3283_v38, %v1708_v45  ;;  %v3412_v22 = vsub.f32 %v3291_v54, %v1708_v45 }
 0x4ad   :  { %v1531_v32 = vadd.f32 %v1530_v25, %v1516_v51  ;;  %v3415_v31 = vsub.f32 %v3299_v61, %v1708_v45  ;;  %v3418_v9 = vsub.f32 %v3307_v57, %v1708_v45  ;;  %v3421_v21 = vsub.f32 %v3315_v60, %v1708_v45 }
 0x4ae   :  { %v3424_v24 = vsub.f32 %v3321_v0, %v1708_v45  ;;  %v3427_v55 = vsub.f32 %v3326_v34, %v1708_v45  ;;  %v3430_v38 = vsub.f32 %v3331_v40, %v1708_v45  ;;  %v3433_v54 = vsub.f32 %v3336_v37, %v1708_v45 }
 0x4af   :  { %v1518_v61 = vmul.f32 %v3356_v30, %v3356_v30  ;;  %v1532_v57 = vadd.f32 %v1531_v32, %v1517_v6  ;;  %v3437_v12 = vsub.f32 %v1683_v8, %v1708_v45  ;;  %v3439_v60 = vsub.f32 %v1684_v52, %v1708_v45 }
 0x4b0   :  { %v1725_v0 = vmul.f32 %v3394_v47, %v3394_v47  ;;  %v1726_v34 = vmul.f32 %v3397_v39, %v3397_v39  ;;  %v1519_v40 = vmul.f32 %v3359_v35, %v3359_v35  ;;  %v1520_v37 = vmul.f32 %v3362_v36, %v3362_v36 }
 0x4b1   :  { %v1533_v44 = vadd.f32 %v1532_v57, %v1518_v61  ;;  %v1727_v8 = vmul.f32 %v3400_v10, %v3400_v10  ;;  %v1521_v52 = vmul.f32 %v3365_v3, %v3365_v3  ;;  %v1728_v48 = vmul.f32 %v3403_v63, %v3403_v63 }
 0x4b2   :  { %v1741_v13 = vadd.f32 %v1726_v34, %v1725_v0  ;;  %v1729_v42 = vmul.f32 %v3406_v23, %v3406_v23  ;;  %v1730_v7 = vmul.f32 %v3409_v16, %v3409_v16  ;;  %v1731_v27 = vmul.f32 %v3412_v22, %v3412_v22 }
 0x4b3   :  { %v1534_v59 = vadd.f32 %v1533_v44, %v1519_v40  ;;  %v1525_v45 = vmul.f32 %v3375_v20, %v3375_v20  ;;  %v1732_v6 = vmul.f32 %v3415_v31, %v3415_v31  ;;  %v1526_v32 = vmul.f32 %v3377_v43, %v3377_v43  ;;  %v3477_v44 = vpop.permute.xlu0 %1875 }
 0x4b4   :  { %v1742_v58 = vadd.f32 %v1741_v13, %v1727_v8  ;;  %v1733_v57 = vmul.f32 %v3418_v9, %v3418_v9  ;;  %v1527_v34 = vmul.f32 %v3379_v46, %v3379_v46  ;;  %v1528_v8 = vmul.f32 %v3381_v17, %v3381_v17 }
 0x4b5   :  { %v1535_v53 = vadd.f32 %v1534_v59, %v1520_v37  ;;  %v1734_v37 = vmul.f32 %v3421_v21, %v3421_v21 }
 0x4b6   :  { %v1743_v62 = vadd.f32 %v1742_v58, %v1728_v48  ;;  %v1529_v48 = vmul.f32 %v3383_v28, %v3383_v28 }
 0x4b7   :  { %v1536_v41 = vadd.f32 %v1535_v53, %v1521_v52  ;;  %v1735_v52 = vmul.f32 %v3424_v24, %v3424_v24 }
 0x4b8   :  { %v1744_v11 = vadd.f32 %v1743_v62, %v1729_v42  ;;  %v3489_v42 = vpop.permute.xlu1 %1885 }
 0x4b9   :  { %v1537_v4 = vadd.f32 %v1536_v41, %v1522_v50  ;;  %v1736_v50 = vmul.f32 %v3427_v55, %v3427_v55 }
 0x4ba   :  { %v1745_v49 = vadd.f32 %v1744_v11, %v1730_v7 }
 0x4bb   :  { %v1538_v15 = vadd.f32 %v1537_v4, %v1523_v2  ;;  %v3491_v2 = vpop.permute.xlu0 %1880  ;;  %v1737_v4 = vmul.f32 %v3430_v38, %v3430_v38 }
 0x4bc   :  { %v1746_v25 = vadd.f32 %v1745_v49, %v1731_v27  ;;  %v1739_v49 = vmul.f32 %v3437_v12, %v3437_v12 }
 0x4bd   :  { %v1539_v51 = vadd.f32 %v1538_v15, %v1524_v18  ;;  %v1738_v18 = vmul.f32 %v3433_v54, %v3433_v54 }
 0x4be   :  { %v1747_v0 = vadd.f32 %v1746_v25, %v1732_v6 }
 0x4bf   :  { %v1540_v61 = vadd.f32 %v1539_v51, %v1525_v45  ;;  %v3499_v51 = vpop.permute.xlu1 %1890  ;;  %v3501_v25 = vpop.permute.xlu0 %1895 }
 0x4c0   :  { %v1748_v59 = vadd.f32 %v1747_v0, %v1733_v57 }
 0x4c1   :  { %v1541_v40 = vadd.f32 %v1540_v61, %v1526_v32  ;;  %v1740_v32 = vmul.f32 %v3439_v60, %v3439_v60 }
 0x4c2   :  { %v1749_v53 = vadd.f32 %v1748_v59, %v1734_v37 }
 0x4c3   :  { %v1542_v13 = vadd.f32 %v1541_v40, %v1527_v34  ;;  %v3505_v37 = vpop.permute.xlu1 %1900 }
 0x4c4   :  { %v1750_v41 = vadd.f32 %v1749_v53, %v1735_v52 }
 0x4c5   :  { %v1543_v58 = vadd.f32 %v1542_v13, %v1528_v8  ;;  %v3507_v8 = vpop.permute.xlu0 %1905 }
 0x4c6   :  { %v1751_v7 = vadd.f32 %v1750_v41, %v1736_v50 }
 0x4c7   :  { %v1544_v62 = vadd.f32 %v1543_v58, %v1529_v48  ;;  %v3509_v50 = vpop.permute.xlu1 %1910 }
 0x4c8   :  { %v1752_v15 = vadd.f32 %v1751_v7, %v1737_v4 }
 0x4c9   :  { %v1545_v11 = vrot.slane %v1544_v62, 4  ;;  %v3511_v41 = vpop.permute.xlu0 %1915 }
 0x4ca   :  { %v1753_v45 = vadd.f32 %v1752_v15, %v1738_v18 }
 0x4cb   :  { %v1546_v27 = vadd.f32 %v1545_v11, %v1544_v62  ;;  %v3513_v11 = vpop.permute.xlu1 %1920 }
 0x4cc   :  { %v1754_v61 = vadd.f32 %v1753_v45, %v1739_v49  ;;  %v3522_v49 = vld [vmem:[%s3860_s10] ss:$0 sm:$0xff] }
 0x4cd   :  { %v1547_v6 = vrot.slane %v1546_v27, 2  ;;  %v3515_v18 = vpop.permute.xlu0 %1925 }
 0x4ce   :  { %v1755_v0 = vadd.f32 %v1754_v61, %v1740_v32 }
 0x4cf   :  { %v1548_v57 = vadd.f32 %v1547_v6, %v1546_v27 }
 0x4d0   :  { %v1756_v40 = vrot.slane %v1755_v0, 4 }
 0x4d1   :  { %v1549_v34 = vrot.slane %v1548_v57, 1 }
 0x4d2   :  { %v1757_v13 = vadd.f32 %v1756_v40, %v1755_v0  ;;  %v3537_v0 = vld [vmem:[%s3861_s11] ss:$0 sm:$0xff] }
 0x4d3   :  { %v1550_v59 = vadd.f32 %v1549_v34, %v1548_v57  ;;  %v3532_v57 = vpop.permute.xlu1 %1930 }
 0x4d4   :  { %v1758_v53 = vrot.slane %v1757_v13, 2 }
 0x4d5   :  { %v1551_v52 = vmul.f32 0.0078125, %v1550_v59 }
 0x4d6   :  { %v1759_v58 = vadd.f32 %v1758_v53, %v1757_v13 }
 0x4d7   :  { %v1552_v48 = vadd.f32 1e-05, %v1551_v52 }
 0x4d8   :  { %v1760_v62 = vrot.slane %v1759_v58, 1 }
 0x4d9   :  { %2387 = vrsqrt.f32 %v1552_v48 }
 0x4da   :  { %v1761_v4 = vadd.f32 %v1760_v62, %v1759_v58 }
 0x4dc   :  { %v1762_v7 = vmul.f32 0.0078125, %v1761_v4 }
 0x4de   :  { %v1763_v15 = vadd.f32 1e-05, %v1762_v7 }
 0x4e0   :  { %2389 = vrsqrt.f32 %v1763_v15 }
 0x4e3   :  { %v3517_v27 = vpop.eup %2387 }
 0x4e4   :  { %v1569_v45 = vmul.f32 %v3517_v27, %v3383_v28  ;;  %v1556_v6 = vmul.f32 %v3517_v27, %v3350_v26  ;;  %v1554_v32 = vmul.f32 %v3517_v27, %v3344_v1  ;;  %v1557_v61 = vmul.f32 %v3517_v27, %v3353_v29  ;;  %v3547_v29 = vpop.permute.xlu0 %1935 }
 0x4e5   :  { %v1555_v34 = vmul.f32 %v3517_v27, %v3347_v5  ;;  %v1559_v28 = vmul.f32 %v3517_v27, %v3359_v35  ;;  %v1558_v26 = vmul.f32 %v3517_v27, %v3356_v30  ;;  %v1561_v1 = vmul.f32 %v3517_v27, %v3365_v3 }
 0x4e6   :  { %v1578_v40 = vmul.f32 %v3522_v49, %v1556_v6  ;;  %v1576_v59 = vmul.f32 %v3522_v49, %v1554_v32  ;;  %v1579_v13 = vmul.f32 %v3522_v49, %v1557_v61  ;;  %v1560_v48 = vmul.f32 %v3517_v27, %v3362_v36  ;;  %v3566_v32 = vpop.permute.xlu1 %1940 }
 0x4e7   :  { %v1577_v52 = vmul.f32 %v3522_v49, %v1555_v34  ;;  %v1581_v5 = vmul.f32 %v3522_v49, %v1559_v28  ;;  %v1580_v35 = vmul.f32 %v3522_v49, %v1558_v26  ;;  %v1583_v7 = vmul.f32 %v3522_v49, %v1561_v1  ;;  %3885 = vst [vmem:[#allocation7_spill] sm:$0xff] %v3566_v32 }
 0x4e8   :  { %v1600_v53 = vadd.f32 %v3537_v0, %v1578_v40  ;;  %v1598_v30 = vadd.f32 %v3537_v0, %v1576_v59  ;;  %v1601_v3 = vadd.f32 %v3537_v0, %v1579_v13  ;;  %v3570_v34 = vpop.permute.xlu0 %1945  ;;  %v3578_v59 = vld [vmem:[%s3868_s18] ss:$0 sm:$0xff] }
 0x4e9   :  { %v1599_v58 = vadd.f32 %v3537_v0, %v1577_v52  ;;  %v1603_v62 = vadd.f32 %v3537_v0, %v1581_v5  ;;  %v1602_v4 = vadd.f32 %v3537_v0, %v1580_v35  ;;  %3886 = vst [vmem:[#allocation8_spill] sm:$0xff] %v3570_v34  ;;  %v1591_v5 = vmul.f32 %v3522_v49, %v1569_v45 }
 0x4ea   :  { %vm1616_vm0 = vcmp.ge.f32.partialorder %v1600_v53, 0.0  ;;  %v1632_v15 = vmul.f32 %v1600_v53, %v2937_v14  ;;  %vm1614_vm1 = vcmp.ge.f32.partialorder %v1598_v30, 0.0  ;;  %v1630_v6 = vmul.f32 %v1598_v30, %v2937_v14  ;;  %v3572_v28 = vpop.eup %2389 }
 0x4eb   :  { %vm1617_vm2 = vcmp.ge.f32.partialorder %v1601_v3, 0.0  ;;  %v1633_v61 = vmul.f32 %v1601_v3, %v2937_v14  ;;  %vm1615_vm3 = vcmp.ge.f32.partialorder %v1599_v58, 0.0  ;;  %v1631_v36 = vmul.f32 %v1599_v58, %v2937_v14 }
 0x4ec   :  { %v1648_v26 = vsel %vm1616_vm0, %v1600_v53, %v1632_v15  ;;  %v1646_v1 = vsel %vm1614_vm1, %v1598_v30, %v1630_v6  ;;  %vm1619_vm4 = vcmp.ge.f32.partialorder %v1603_v62, 0.0  ;;  %v1635_v40 = vmul.f32 %v1603_v62, %v2937_v14 }
 0x4ed   :  { %v1780_v13 = vmul.f32 %v3572_v28, %v3439_v60  ;;  %v1649_v52 = vsel %vm1617_vm2, %v1601_v3, %v1633_v61  ;;  %v3584_v35 = vmul.f32 %v3489_v42, %v1648_v26  ;;  %v1647_v34 = vsel %vm1615_vm3, %v1599_v58, %v1631_v36  ;;  %v3600_v3 = vpop.permute.xlu1 %1950 }
 0x4ee   :  { %v1605_v53 = vadd.f32 %v3537_v0, %v1583_v7  ;;  %v3588_v30 = vmul.f32 %v3477_v44, %v1646_v1  ;;  %v3591_v15 = vmul.f32 %v3499_v51, %v1649_v52  ;;  %v1651_v6 = vsel %vm1619_vm4, %v1603_v62, %v1635_v40  ;;  %v3611_v7 = vpop.permute.xlu0 %2002 }
 0x4ef   :  { %v1634_v32 = vmul.f32 %v1602_v4, %v2937_v14  ;;  %v3595_v60 = vmul.f32 %v3578_v59, %v1780_v13  ;;  %vm1618_vm5 = vcmp.ge.f32.partialorder %v1602_v4, 0.0  ;;  %v1582_v45 = vmul.f32 %v3522_v49, %v1560_v48 }
 0x4f0   :  { %v1563_v42 = vmul.f32 %v3517_v27, %v3371_v33  ;;  %v3603_v44 = vmul.f32 %v3491_v2, %v1647_v34  ;;  %v1562_v51 = vmul.f32 %v3517_v27, %v3368_v56  ;;  %v1565_v58 = vmul.f32 %v3517_v27, %v3375_v20 }
 0x4f1   :  { %v1564_v62 = vmul.f32 %v3517_v27, %v3373_v19  ;;  %vm1621_vm6 = vcmp.ge.f32.partialorder %v1605_v53, 0.0  ;;  %v1637_v48 = vmul.f32 %v1605_v53, %v2937_v14  ;;  %v1604_v33 = vadd.f32 %v3537_v0, %v1582_v45 }
 0x4f2   :  { %v1585_v61 = vmul.f32 %v3522_v49, %v1563_v42  ;;  %v1650_v2 = vsel %vm1618_vm5, %v1602_v4, %v1634_v32  ;;  %v1584_v36 = vmul.f32 %v3522_v49, %v1562_v51  ;;  %v1587_v56 = vmul.f32 %v3522_v49, %v1565_v58  ;;  %v3631_v42 = vpop.permute.xlu1 %2006  ;;  %v3634_v58 = vpop.permute.xlu0 %2014 }
 0x4f3   :  { %v1586_v34 = vmul.f32 %v3522_v49, %v1564_v62  ;;  %vm1620_vm7 = vcmp.ge.f32.partialorder %v1604_v33, 0.0  ;;  %v1636_v20 = vmul.f32 %v1604_v33, %v2937_v14  ;;  %v1567_v26 = vmul.f32 %v3517_v27, %v3379_v46 }
 0x4f4   :  { %v1607_v19 = vadd.f32 %v3537_v0, %v1585_v61  ;;  %v1606_v1 = vadd.f32 %v3537_v0, %v1584_v36  ;;  %v1609_v40 = vadd.f32 %v3537_v0, %v1587_v56  ;;  %v1566_v32 = vmul.f32 %v3517_v27, %v3377_v43 }
 0x4f5   :  { %v1608_v4 = vadd.f32 %v3537_v0, %v1586_v34  ;;  %v1653_v13 = vsel %vm1621_vm6, %v1605_v53, %v1637_v48  ;;  %v1589_v45 = vmul.f32 %v3522_v49, %v1567_v26  ;;  %v1652_v51 = vsel %vm1620_vm7, %v1604_v33, %v1636_v20 }
 0x4f6   :  { %vm1623_vm8 = vcmp.ge.f32.partialorder %v1607_v19, 0.0  ;;  %v1639_v52 = vmul.f32 %v1607_v19, %v2937_v14  ;;  %vm1622_vm9 = vcmp.ge.f32.partialorder %v1606_v1, 0.0  ;;  %v1638_v46 = vmul.f32 %v1606_v1, %v2937_v14 }
 0x4f7   :  { %vm1625_vm10 = vcmp.ge.f32.partialorder %v1609_v40, 0.0  ;;  %v1641_v61 = vmul.f32 %v1609_v40, %v2937_v14  ;;  %vm1624_vm11 = vcmp.ge.f32.partialorder %v1608_v4, 0.0  ;;  %v1640_v43 = vmul.f32 %v1608_v4, %v2937_v14 }
 0x4f8   :  { %v1655_v62 = vsel %vm1623_vm8, %v1607_v19, %v1639_v52  ;;  %v3639_v53 = vmul.f32 %v3505_v37, %v1651_v6  ;;  %v3642_v48 = vmul.f32 %v3501_v25, %v1650_v2  ;;  %v1654_v36 = vsel %vm1622_vm9, %v1606_v1, %v1638_v46 }
 0x4f9   :  { %v1588_v33 = vmul.f32 %v3522_v49, %v1566_v32  ;;  %v3646_v56 = vmul.f32 %v3509_v50, %v1653_v13  ;;  %v1657_v34 = vsel %vm1625_vm10, %v1609_v40, %v1641_v61  ;;  %v1611_v20 = vadd.f32 %v3537_v0, %v1589_v45  ;;  %v2011_v40 = vpop.permute.xlu1 %2010 }
 0x4fa   :  { %v1613_v19 = vadd.f32 %v3537_v0, %v1591_v5  ;;  %v3651_v26 = vmul.f32 %v3507_v8, %v1652_v51  ;;  %v3654_v37 = vmul.f32 %v3513_v11, %v1655_v62  ;;  %v3657_v25 = vmul.f32 %v3511_v41, %v1654_v36 }
 0x4fb   :  { %v1656_v6 = vsel %vm1624_vm11, %v1608_v4, %v1640_v43  ;;  %v3660_v2 = vmul.f32 %v3532_v57, %v1657_v34  ;;  %v1610_v50 = vadd.f32 %v3537_v0, %v1588_v33  ;;  %v1568_v5 = vmul.f32 %v3517_v27, %v3381_v17  ;;  %v3672_v57 = vpop.permute.xlu0 %2022  ;;  %v3681_v27 = vld [vmem:[%s3869_s19] ss:$0 sm:$0xff] }
 0x4fc   :  { %v1645_v1 = vmul.f32 %v1613_v19, %v2937_v14  ;;  %vm1629_vm12 = vcmp.ge.f32.partialorder %v1613_v19, 0.0  ;;  %v1766_v8 = vmul.f32 %v3572_v28, %v3397_v39  ;;  %v1765_v41 = vmul.f32 %v3572_v28, %v3394_v47 }
 0x4fd   :  { %v1767_v11 = vmul.f32 %v3572_v28, %v3400_v10  ;;  %v3675_v4 = vmul.f32 %v3515_v18, %v1656_v6  ;;  %vm1627_vm13 = vcmp.ge.f32.partialorder %v1611_v20, 0.0  ;;  %vm1626_vm14 = vcmp.ge.f32.partialorder %v1610_v50, 0.0  ;;  %v2019_v33 = vpop.permute.xlu1 %2018 }
 0x4fe   :  { %v1642_v17 = vmul.f32 %v1610_v50, %v2937_v14  ;;  %v1643_v39 = vmul.f32 %v1611_v20, %v2937_v14  ;;  %v1590_v47 = vmul.f32 %v3522_v49, %v1568_v5  ;;  %v1788_v10 = vmul.f32 %v3578_v59, %v1766_v8 }
 0x4ff   :  { %v1787_v32 = vmul.f32 %v3578_v59, %v1765_v41  ;;  %v1661_v13 = vsel %vm1629_vm12, %v1613_v19, %v1645_v1  ;;  %v1789_v18 = vmul.f32 %v3578_v59, %v1767_v11  ;;  %v1768_v52 = vmul.f32 %v3572_v28, %v3403_v63  ;;  %v3709_v19 = vpop.permute.xlu0 %2030 }
 0x500   :  { %v1769_v45 = vmul.f32 %v3572_v28, %v3406_v23  ;;  %v1658_v51 = vsel %vm1626_vm14, %v1610_v50, %v1642_v17  ;;  %v3693_v46 = vadd.f32 %v3537_v0, %v1590_v47  ;;  %v1810_v62 = vadd.f32 %v3681_v27, %v1788_v10 }
 0x501   :  { %v1809_v49 = vadd.f32 %v3681_v27, %v1787_v32  ;;  %v1811_v61 = vadd.f32 %v3681_v27, %v1789_v18  ;;  %v1790_v43 = vmul.f32 %v3578_v59, %v1768_v52  ;;  %v1770_v63 = vmul.f32 %v3572_v28, %v3409_v16 }
 0x502   :  { %v1791_v36 = vmul.f32 %v3578_v59, %v1769_v45  ;;  %v3703_v23 = vsel %vm1627_vm13, %v1611_v20, %v1643_v39  ;;  %v3706_v0 = vmul.f32 %v3600_v3, %v1661_v13  ;;  %vm1826_vm15 = vcmp.ge.f32.partialorder %v1810_v62, 0.0  ;;  %v2027_v13 = vpop.permute.xlu1 %2026 }
 0x503   :  { %v1842_v34 = vmul.f32 %v1810_v62, %v2937_v14  ;;  %vm1825_vm0 = vcmp.ge.f32.partialorder %v1809_v49, 0.0  ;;  %v1841_v6 = vmul.f32 %v1809_v49, %v2937_v14  ;;  %vm1827_vm1 = vcmp.ge.f32.partialorder %v1811_v61, 0.0 }
 0x504   :  { %v1843_v50 = vmul.f32 %v1811_v61, %v2937_v14  ;;  %v3714_v1 = vmul.f32 %v3547_v29, %v1658_v51  ;;  %v1812_v20 = vadd.f32 %v3681_v27, %v1790_v43  ;;  %v1813_v3 = vadd.f32 %v3681_v27, %v1791_v36 }
 0x505   :  { %v1858_v16 = vsel %vm1826_vm15, %v1810_v62, %v1842_v34  ;;  %v3720_v5 = vmul.f32 %v3693_v46, %v2937_v14  ;;  %v1857_v41 = vsel %vm1825_vm0, %v1809_v49, %v1841_v6  ;;  %v1792_v32 = vmul.f32 %v3578_v59, %v1770_v63 }
 0x506   :  { %v2066_v8 = vmul.f32 %v3631_v42, %v1858_v16  ;;  %v1859_v11 = vsel %vm1827_vm1, %v1811_v61, %v1843_v50  ;;  %v2065_v17 = vmul.f32 %v3611_v7, %v1857_v41  ;;  %vm1828_vm2 = vcmp.ge.f32.partialorder %v1812_v20, 0.0 }
 0x507   :  { %v2067_v39 = vmul.f32 %v2011_v40, %v1859_v11  ;;  %v1844_v29 = vmul.f32 %v1812_v20, %v2937_v14  ;;  %vm1829_vm3 = vcmp.ge.f32.partialorder %v1813_v3, 0.0  ;;  %v1845_v10 = vmul.f32 %v1813_v3, %v2937_v14  ;;  %v2039_v40 = vpop.permute.xlu0 %2038 }
 0x508   :  { %v2082_v47 = vadd.f32 %v2066_v8, %v3603_v44  ;;  %v2081_v18 = vadd.f32 %v2065_v17, %v3588_v30  ;;  %v1771_v7 = vmul.f32 %v3572_v28, %v3412_v22  ;;  %v1814_v51 = vadd.f32 %v3681_v27, %v1792_v32 }
 0x509   :  { %v2083_v42 = vadd.f32 %v2067_v39, %v3584_v35  ;;  %v1860_v52 = vsel %vm1828_vm2, %v1812_v20, %v1844_v29  ;;  %v1861_v45 = vsel %vm1829_vm3, %v1813_v3, %v1845_v10  ;;  %v1772_v62 = vmul.f32 %v3572_v28, %v3415_v31 }
 0x50a   :  { %2098 = vst [vmem:[%s3870_s20 + $0x8] sm:$0xff] %v2082_v47  ;;  %v2068_v44 = vmul.f32 %v3634_v58, %v1860_v52  ;;  %2097 = vst [vmem:[%s3870_s20] sm:$0xff] %v2081_v18  ;;  %v2069_v22 = vmul.f32 %v2019_v33, %v1861_v45  ;;  %v1793_v35 = vmul.f32 %v3578_v59, %v1771_v7  ;;  %vm1830_vm4 = vcmp.ge.f32.partialorder %v1814_v51, 0.0 }
 0x50b   :  { %2099 = vst [vmem:[%s3870_s20 + $0x10] sm:$0xff] %v2083_v42  ;;  %v1773_v30 = vmul.f32 %v3572_v28, %v3418_v9  ;;  %v1774_v58 = vmul.f32 %v3572_v28, %v3421_v21  ;;  %v1846_v31 = vmul.f32 %v1814_v51, %v2937_v14  ;;  %v1794_v61 = vmul.f32 %v3578_v59, %v1772_v62  ;;  %v2047_v20 = vpop.permute.xlu0 %2046 }
 0x50c   :  { %v2084_v49 = vadd.f32 %v2068_v44, %v3591_v15  ;;  %v2085_v43 = vadd.f32 %v2069_v22, %v3642_v48  ;;  %v1815_v36 = vadd.f32 %v3681_v27, %v1793_v35  ;;  %v2035_v15 = vpop.permute.xlu1 %2034  ;;  %v1775_v34 = vmul.f32 %v3572_v28, %v3424_v24 }
 0x50d   :  { %v1795_v33 = vmul.f32 %v3578_v59, %v1773_v30  ;;  %v1796_v63 = vmul.f32 %v3578_v59, %v1774_v58  ;;  %v1862_v9 = vsel %vm1830_vm4, %v1814_v51, %v1846_v31  ;;  %v1816_v21 = vadd.f32 %v3681_v27, %v1794_v61 }
 0x50e   :  { %2100 = vst [vmem:[%s3870_s20 + $0x18] sm:$0xff] %v2084_v49  ;;  %v1776_v48 = vmul.f32 %v3572_v28, %v3427_v55  ;;  %2101 = vst [vmem:[%s3870_s20 + $0x20] sm:$0xff] %v2085_v43  ;;  %v2070_v6 = vmul.f32 %v3672_v57, %v1862_v9  ;;  %vm1831_vm5 = vcmp.ge.f32.partialorder %v1815_v36, 0.0  ;;  %v1847_v50 = vmul.f32 %v1815_v36, %v2937_v14 }
 0x50f   :  { %v1817_v16 = vadd.f32 %v3681_v27, %v1795_v33  ;;  %vm1832_vm6 = vcmp.ge.f32.partialorder %v1816_v21, 0.0  ;;  %v1848_v3 = vmul.f32 %v1816_v21, %v2937_v14  ;;  %v1818_v24 = vadd.f32 %v3681_v27, %v1796_v63 }
 0x510   :  { %v1797_v8 = vmul.f32 %v3578_v59, %v1775_v34  ;;  %vm1628_vm7 = vcmp.ge.f32.partialorder %v3693_v46, 0.0  ;;  %v2086_v55 = vadd.f32 %v2070_v6, %v3639_v53  ;;  %v1863_v41 = vsel %vm1831_vm5, %v1815_v36, %v1847_v50 }
 0x511   :  { %vm1833_vm8 = vcmp.ge.f32.partialorder %v1817_v16, 0.0  ;;  %v1849_v57 = vmul.f32 %v1817_v16, %v2937_v14  ;;  %v2071_v11 = vmul.f32 %v2027_v13, %v1863_v41  ;;  %v1864_v17 = vsel %vm1832_vm6, %v1816_v21, %v1848_v3  ;;  %v2043_v13 = vpop.permute.xlu1 %2042 }
 0x512   :  { %vm1834_vm9 = vcmp.ge.f32.partialorder %v1818_v24, 0.0  ;;  %v1850_v39 = vmul.f32 %v1818_v24, %v2937_v14  ;;  %2102 = vst [vmem:[%s3870_s20 + $0x28] sm:$0xff] %v2086_v55  ;;  %v2072_v29 = vmul.f32 %v3709_v19, %v1864_v17  ;;  %v1819_v10 = vadd.f32 %v3681_v27, %v1797_v8  ;;  %v2055_v19 = vpop.permute.xlu0 %2054 }
 0x513   :  { %v1865_v47 = vsel %vm1833_vm8, %v1817_v16, %v1849_v57  ;;  %v1798_v53 = vmul.f32 %v3578_v59, %v1776_v48  ;;  %v2087_v32 = vadd.f32 %v2071_v11, %v3651_v26  ;;  %v1777_v52 = vmul.f32 %v3572_v28, %v3430_v38 }
 0x514   :  { %v2073_v18 = vmul.f32 %v2035_v15, %v1865_v47  ;;  %v1866_v42 = vsel %vm1834_vm9, %v1818_v24, %v1850_v39  ;;  %v2088_v7 = vadd.f32 %v2072_v29, %v3646_v56  ;;  %vm1835_vm10 = vcmp.ge.f32.partialorder %v1819_v10, 0.0 }
 0x515   :  { %v2074_v44 = vmul.f32 %v2039_v40, %v1866_v42  ;;  %v1851_v45 = vmul.f32 %v1819_v10, %v2937_v14  ;;  %2103 = vst [vmem:[%s3870_s20 + $0x30] sm:$0xff] %v2087_v32  ;;  %v1820_v26 = vadd.f32 %v3681_v27, %v1798_v53  ;;  %v1799_v62 = vmul.f32 %v3578_v59, %v1777_v52  ;;  %v2051_v31 = vpop.permute.xlu1 %2050 }
 0x516   :  { %v2089_v51 = vadd.f32 %v2073_v18, %v3657_v25  ;;  %v1778_v38 = vmul.f32 %v3572_v28, %v3433_v54  ;;  %2104 = vst [vmem:[%s3870_s20 + $0x38] sm:$0xff] %v2088_v7  ;;  %v1779_v22 = vmul.f32 %v3572_v28, %v3437_v12  ;;  %v1824_v25 = vadd.f32 %v3681_v27, %v3595_v60  ;;  %v2063_v63 = vpop.permute.xlu0 %2062 }
 0x517   :  { %v2090_v56 = vadd.f32 %v2074_v44, %v3654_v37  ;;  %v1867_v40 = vsel %vm1835_vm10, %v1819_v10, %v1851_v45  ;;  %vm1836_vm11 = vcmp.ge.f32.partialorder %v1820_v26, 0.0  ;;  %v1852_v54 = vmul.f32 %v1820_v26, %v2937_v14 }
 0x518   :  { %2105 = vst [vmem:[%s3870_s20 + $0x40] sm:$0xff] %v2089_v51  ;;  %v2075_v35 = vmul.f32 %v2043_v13, %v1867_v40  ;;  %v1821_v30 = vadd.f32 %v3681_v27, %v1799_v62  ;;  %v1800_v37 = vmul.f32 %v3578_v59, %v1778_v38  ;;  %v1801_v12 = vmul.f32 %v3578_v59, %v1779_v22 }
 0x519   :  { %2106 = vst [vmem:[%s3870_s20 + $0x48] sm:$0xff] %v2090_v56  ;;  %vm1840_vm12 = vcmp.ge.f32.partialorder %v1824_v25, 0.0  ;;  %v1856_v28 = vmul.f32 %v1824_v25, %v2937_v14  ;;  %v1868_v58 = vsel %vm1836_vm11, %v1820_v26, %v1852_v54  ;;  %v1660_v59 = vsel %vm1628_vm7, %v3693_v46, %v3720_v5  ;;  %v3888_v5 = vld [vmem:[#allocation8_spill] sm:$0xff]  ;;  %v2059_v24 = vpop.permute.xlu1 %2058 }
 0x51a   :  { %v2091_v60 = vadd.f32 %v2075_v35, %v3675_v4  ;;  %vm1837_vm13 = vcmp.ge.f32.partialorder %v1821_v30, 0.0  ;;  %v1853_v49 = vmul.f32 %v1821_v30, %v2937_v14  ;;  %v2076_v61 = vmul.f32 %v2047_v20, %v1868_v58 }
 0x51b   :  { %v1822_v43 = vadd.f32 %v3681_v27, %v1800_v37  ;;  %v1823_v36 = vadd.f32 %v3681_v27, %v1801_v12  ;;  %v1872_v33 = vsel %vm1840_vm12, %v1824_v25, %v1856_v28  ;;  %v3887_v27 = vld [vmem:[#allocation7_spill] sm:$0xff]  ;;  %v1967_v50 = vmul.f32 %v3888_v5, %v1660_v59 }
 0x51c   :  { %2107 = vst [vmem:[%s3870_s20 + $0x50] sm:$0xff] %v2091_v60  ;;  %v1869_v4 = vsel %vm1837_vm13, %v1821_v30, %v1853_v49  ;;  %v2080_v9 = vmul.f32 %v2063_v63, %v1872_v33  ;;  %v2092_v21 = vadd.f32 %v2076_v61, %v3660_v2  ;;  %v1966_v48 = vmul.f32 %v3887_v27, %v3703_v23 }
 0x51d   :  { %v2077_v15 = vmul.f32 %v2051_v31, %v1869_v4  ;;  %vm1838_vm14 = vcmp.ge.f32.partialorder %v1822_v43, 0.0  ;;  %v1854_v34 = vmul.f32 %v1822_v43, %v2937_v14  ;;  %vm1839_vm15 = vcmp.ge.f32.partialorder %v1823_v36, 0.0 }
 0x51e   :  { %v1855_v6 = vmul.f32 %v1823_v36, %v2937_v14  ;;  %v2096_v46 = vadd.f32 %v2080_v9, %v3706_v0  ;;  %2108 = vst [vmem:[%s3870_s20 + $0x58] sm:$0xff] %v2092_v21 }
 0x51f   :  { %v2093_v2 = vadd.f32 %v2077_v15, %v3714_v1  ;;  %v1870_v16 = vsel %vm1838_vm14, %v1822_v43, %v1854_v34 }
 0x520   :  { %v2078_v20 = vmul.f32 %v2055_v19, %v1870_v16  ;;  %v1871_v3 = vsel %vm1839_vm15, %v1823_v36, %v1855_v6  ;;  %2112 = vst [vmem:[%s3870_s20 + $0x78] sm:$0xff] %v2096_v46 }
 0x521   :  { %2109 = vst [vmem:[%s3870_s20 + $0x60] sm:$0xff] %v2093_v2  ;;  %v2079_v14 = vmul.f32 %v2059_v24, %v1871_v3 }
 0x522   :  { %v2094_v23 = vadd.f32 %v2078_v20, %v1966_v48 }
 0x523   :  { %v2095_v0 = vadd.f32 %v2079_v14, %v1967_v50 }
 0x524   :  { %2110 = vst [vmem:[%s3870_s20 + $0x68] sm:$0xff] %v2094_v23 }
 0x525   :  { %2111 = vst [vmem:[%s3870_s20 + $0x70] sm:$0xff] %v2095_v0 }

</bundles_post_ra>
